<compile_context>
chip_gen: v5e
topology: v5e:2x2
jax: 0.10.0
libtpu: 0.0.40
codegen_flags: <defaults>
</compile_context>

<pallas_src>
import functools
import math

import jax
import jax.numpy as jnp
from jax.experimental import pallas as pl
from jax.experimental.pallas import tpu as pltpu

PAD_TOKEN = 0


# ----------------------------- kernels ------------------------------------- #

def _layernorm(x, gamma, beta, eps=1e-5):
    mean = jnp.mean(x, axis=-1, keepdims=True)
    var = jnp.mean(jnp.square(x - mean), axis=-1, keepdims=True)
    return (x - mean) * jax.lax.rsqrt(var + eps) * gamma + beta


def _decoder_stack_kernel(pad_ref, x_ref,
                          wq_ref, bq_ref, wk_ref, bk_ref, wv_ref, bv_ref,
                          wo_ref, bo_ref,
                          g1_ref, be1_ref,
                          w1_ref, bf1_ref, w2_ref, bf2_ref,
                          g2_ref, be2_ref,
                          o_ref, x_sc, *, H):
    """Whole decoder stack for one batch element.

    Grid = (B, N_layers).  Per grid step this applies ONE post-LN decoder
    layer: MHA (causal + pad mask) + residual + LN, then FFN(D->d->D, ReLU) +
    residual + LN.  The activation lives in VMEM scratch across the layer
    axis; weight blocks (indexed by the layer grid axis) are prefetched by the
    BlockSpec pipeline while the previous layer computes.

    All matmuls take bf16 operands with f32 MXU accumulation.  Heads use
    pre-split (H, D, Dh)/(H, Dh, D) weight tiles indexed on a leading axis, so
    there is no lane slicing and no concatenate; the output projection is
    accumulated per head into a single (L, D) f32 value."""
    n = pl.program_id(1)
    n_last = pl.num_programs(1) - 1

    @pl.when(n == 0)
    def _():
        x_sc[...] = x_ref[0]                       # load embeddings once per b

    x = x_sc[...]                                  # (L, D) f32
    L, D = x.shape
    Dh = D // H
    xb = x.astype(jnp.bfloat16)

    # Causal + pad mask built in-kernel from (1, L) pad flags (no (L, L) HBM
    # mask stream); pure VPU work that co-issues with the MXU matmuls.
    pad = pad_ref[0]                                           # (1, L) f32
    row = jax.lax.broadcasted_iota(jnp.int32, (L, L), 0)
    col = jax.lax.broadcasted_iota(jnp.int32, (L, L), 1)
    masked = jnp.logical_or(col > row, pad > 0.5)              # (L, L)
    neg_mask = jnp.where(masked, jnp.float32(-1e9), jnp.float32(0.0))

    scale = jnp.float32(1.0 / math.sqrt(Dh))
    qkT_dims = (((1,), (1,)), ((), ()))    # contract last dims: q @ k^T

    # TODO(synk): for long L, tile this flash-style (query-tile grid axis +
    # online softmax over KV blocks) so only (tq, tk) logits are live.
    attn = jnp.zeros((L, D), jnp.float32)
    for h in range(H):                 # static unroll; leading-dim weight index
        qh = jnp.dot(xb, wq_ref[0, h], preferred_element_type=jnp.float32) + bq_ref[0, h]
        kh = jnp.dot(xb, wk_ref[0, h], preferred_element_type=jnp.float32) + bk_ref[0, h]
        vh = jnp.dot(xb, wv_ref[0, h], preferred_element_type=jnp.float32) + bv_ref[0, h]

        logits = jax.lax.dot_general(
            qh.astype(jnp.bfloat16), kh.astype(jnp.bfloat16), qkT_dims,
            preferred_element_type=jnp.float32) * scale + neg_mask
        m = jnp.max(logits, axis=-1, keepdims=True)
        p = jnp.exp(logits - m)
        p = p * pl.reciprocal(jnp.sum(p, axis=-1, keepdims=True), approx=True)

        ctx_h = jnp.dot(p.astype(jnp.bfloat16), vh.astype(jnp.bfloat16),
                        preferred_element_type=jnp.float32)     # (L, Dh)
        # Output projection accumulated per head (replaces concat + big GEMM).
        attn = attn + jnp.dot(ctx_h.astype(jnp.bfloat16), wo_ref[0, h],
                              preferred_element_type=jnp.float32)
    attn = attn + bo_ref[0]
    # TODO(synk): dropout omitted (deterministic, eval-style forward).
    out1 = _layernorm(x + attn, g1_ref[0], be1_ref[0])

    hidden = jnp.maximum(
        jnp.dot(out1.astype(jnp.bfloat16), w1_ref[0],
                preferred_element_type=jnp.float32) + bf1_ref[0],
        0.0)
    ffn = jnp.dot(hidden.astype(jnp.bfloat16), w2_ref[0],
                  preferred_element_type=jnp.float32) + bf2_ref[0]
    out2 = _layernorm(out1 + ffn, g2_ref[0], be2_ref[0])

    x_sc[...] = out2                               # carry to next layer step

    @pl.when(n == n_last)
    def _():
        o_ref[0] = out2                            # single HBM writeback per b


def _fc_kernel(x_ref, w_ref, b_ref, o_ref):
    """Final projection to (lane-padded) vocab logits for one batch element."""
    o_ref[0] = (jnp.dot(x_ref[0].astype(jnp.bfloat16), w_ref[...],
                        preferred_element_type=jnp.float32) + b_ref[0])


# ----------------------------- wrappers ------------------------------------ #

_LAYER_KEYS = ("wq", "bq", "wk", "bk", "wv", "bv", "wo", "bo",
               "g1", "be1", "w1", "bf1", "w2", "bf2", "g2", "be2")


def run_decoder_stack(x, pad, stacked, H):
    """x: (B, L, D) f32, pad: (B, 1, L) f32, stacked: dict of layer-stacked
    weights with leading layer dim N."""
    B, L, D = x.shape
    n_layers = stacked["wq"].shape[0]
    weights = [stacked[k] for k in _LAYER_KEYS]

    def layer_spec(arr):
        # One layer's slab per grid step; streamed (double-buffered) along the
        # layer axis so next-layer weight DMA hides under current compute.
        nd = arr.ndim
        return pl.BlockSpec((1,) + arr.shape[1:],
                            lambda b, n, _nd=nd: (n,) + (0,) * (_nd - 1))

    in_specs = [pl.BlockSpec((1, 1, L), lambda b, n: (b, 0, 0)),   # pad flags
                pl.BlockSpec((1, L, D), lambda b, n: (b, 0, 0))]   # embeddings
    in_specs += [layer_spec(w) for w in weights]

    return pl.pallas_call(
        functools.partial(_decoder_stack_kernel, H=H),
        out_shape=jax.ShapeDtypeStruct((B, L, D), jnp.float32),
        grid=(B, n_layers),
        in_specs=in_specs,
        out_specs=pl.BlockSpec((1, L, D), lambda b, n: (b, 0, 0)),
        scratch_shapes=[pltpu.VMEM((L, D), jnp.float32)],
        compiler_params=pltpu.CompilerParams(
            # batch elems independent; layer axis carries the activation
            dimension_semantics=("parallel", "arbitrary")),
    )(pad, x, *weights)


def run_fc(x, w, b):
    B, L, D = x.shape
    V = w.shape[1]
    V_pad = ((V + 127) // 128) * 128              # lane-dense vocab dim
    if V_pad != V:
        w = jnp.pad(w, ((0, 0), (0, V_pad - V)))
        b = jnp.pad(b, ((0, 0), (0, V_pad - V)))
    out = pl.pallas_call(
        _fc_kernel,
        out_shape=jax.ShapeDtypeStruct((B, L, V_pad), jnp.float32),
        grid=(B,),
        in_specs=[pl.BlockSpec((1, L, D), lambda i: (i, 0, 0)),
                  pl.BlockSpec(w.shape, lambda i: (0, 0)),
                  pl.BlockSpec(b.shape, lambda i: (0, 0))],
        out_specs=pl.BlockSpec((1, L, V_pad), lambda i: (i, 0, 0)),
        compiler_params=pltpu.CompilerParams(
            dimension_semantics=("parallel",)),
    )(x, w, b)
    return out[..., :V]


# --------------------------- model (glue) ----------------------------------- #

def sinusoidal_pos_encoding(L, D):
    pos = jnp.arange(L, dtype=jnp.float32)[:, None]
    i = jnp.arange(D, dtype=jnp.float32)[None, :]
    angle = pos / jnp.power(10000.0, (2.0 * jnp.floor(i / 2.0)) / D)
    pe = jnp.where((jnp.arange(D) % 2) == 0, jnp.sin(angle), jnp.cos(angle))
    return pe.astype(jnp.float32)  # (L, D)


def make_pad_flags(tokens):
    """(B, 1, L) float pad flags; 1.0 = key position is PAD (mask built in-kernel)."""
    return (tokens == PAD_TOKEN).astype(jnp.float32)[:, None, :]


def init_params(key, D, N, H, d, vocab):
    """Layer weights are stacked on a leading layer axis so the decoder stack
    can stream them through one pallas_call."""
    Dh = D // H

    def normal(k, shape, scale=0.02, dtype=jnp.bfloat16):
        return (scale * jax.random.normal(k, shape)).astype(dtype)

    keys = jax.random.split(key, 2 + 6)
    params = {
        "embedding": normal(keys[0], (vocab, D), dtype=jnp.float32),
        "fc_w": normal(keys[1], (D, vocab)),                       # bf16
        "fc_b": jnp.zeros((1, vocab), jnp.float32),
        "layers": {
            # per-head split projections: (N, H, D, Dh) in, (N, H, Dh, D) out
            "wq": normal(keys[2], (N, H, D, Dh)),
            "bq": jnp.zeros((N, H, 1, Dh), jnp.float32),
            "wk": normal(keys[3], (N, H, D, Dh)),
            "bk": jnp.zeros((N, H, 1, Dh), jnp.float32),
            "wv": normal(keys[4], (N, H, D, Dh)),
            "bv": jnp.zeros((N, H, 1, Dh), jnp.float32),
            "wo": normal(keys[5], (N, H, Dh, D)),
            "bo": jnp.zeros((N, 1, D), jnp.float32),
            "g1": jnp.ones((N, 1, D), jnp.float32),
            "be1": jnp.zeros((N, 1, D), jnp.float32),
            "w1": normal(keys[6], (N, D, d)),
            "bf1": jnp.zeros((N, 1, d), jnp.float32),
            "w2": normal(keys[7], (N, d, D)),
            "bf2": jnp.zeros((N, 1, D), jnp.float32),
            "g2": jnp.ones((N, 1, D), jnp.float32),
            "be2": jnp.zeros((N, 1, D), jnp.float32),
        },
    }
    return params


def music_transformer_forward(tokens, params, *, D, H):
    """Training-mode forward: (B, L) int32 tokens -> (B, L, vocab) logits."""
    B, L = tokens.shape
    # TODO(synk): layers.Decoder uses relative global attention (skew trick);
    # standard scaled-dot-product attention is used here instead.
    x = params["embedding"][tokens] * math.sqrt(D)           # (B, L, D) f32
    x = x + sinusoidal_pos_encoding(L, D)[None, :, :]
    pad = make_pad_flags(tokens)                             # (B, 1, L)
    x = run_decoder_stack(x, pad, params["layers"], H)       # all N layers
    return run_fc(x, params["fc_w"], params["fc_b"])         # (B, L, vocab)
    # TODO(synk): autoregressive generate() loop (OneHotCategorical sampling)
    # is inference-only host-side control flow and is not kernelized.


# ------------------------------- main --------------------------------------- #

if __name__ == "__main__":
    B, L = 2, 8
    D, N, H, d = 32, 2, 4, 16
    vocab_size = 64

    key = jax.random.PRNGKey(0)
    k_tok, k_par = jax.random.split(key)

    tokens = jax.random.randint(k_tok, (B, L), 1, vocab_size, dtype=jnp.int32)
    tokens = tokens.at[1, -2:].set(PAD_TOKEN)  # exercise the pad mask

    params = init_params(k_par, D, N, H, d, vocab_size)

    logits = music_transformer_forward(tokens, params, D=D, H=H)
    logits = jax.block_until_ready(logits)

    assert logits.shape == (B, L, vocab_size), logits.shape
    assert logits.dtype == jnp.float32
    assert bool(jnp.all(jnp.isfinite(logits)))
    print("KERNEL_OK")
</pallas_src>

<mosaic_0001>
module attributes {stable_mosaic.version = 11 : i64} {
  func.func @_decoder_stack_kernel(%arg0: i32, %arg1: i32, %arg2: memref<1x1x8xf32, #tpu.memory_space<vmem>>, %arg3: memref<1x8x32xf32, #tpu.memory_space<vmem>>, %arg4: memref<1x4x32x8xbf16, #tpu.memory_space<vmem>>, %arg5: memref<1x4x1x8xf32, #tpu.memory_space<vmem>>, %arg6: memref<1x4x32x8xbf16, #tpu.memory_space<vmem>>, %arg7: memref<1x4x1x8xf32, #tpu.memory_space<vmem>>, %arg8: memref<1x4x32x8xbf16, #tpu.memory_space<vmem>>, %arg9: memref<1x4x1x8xf32, #tpu.memory_space<vmem>>, %arg10: memref<1x4x8x32xbf16, #tpu.memory_space<vmem>>, %arg11: memref<1x1x32xf32, #tpu.memory_space<vmem>>, %arg12: memref<1x1x32xf32, #tpu.memory_space<vmem>>, %arg13: memref<1x1x32xf32, #tpu.memory_space<vmem>>, %arg14: memref<1x32x16xbf16, #tpu.memory_space<vmem>>, %arg15: memref<1x1x16xf32, #tpu.memory_space<vmem>>, %arg16: memref<1x16x32xbf16, #tpu.memory_space<vmem>>, %arg17: memref<1x1x32xf32, #tpu.memory_space<vmem>>, %arg18: memref<1x1x32xf32, #tpu.memory_space<vmem>>, %arg19: memref<1x1x32xf32, #tpu.memory_space<vmem>>, %arg20: memref<1x8x32xf32, #tpu.memory_space<vmem>>, %arg21: memref<8x32xf32, #tpu.memory_space<vmem>>) attributes {dimension_semantics = [#tpu.dimension_semantics<parallel>, #tpu.dimension_semantics<arbitrary>], iteration_bounds = array<i64: 2, 2>, scalar_prefetch = 0 : i64, scratch_operands = 1 : i64, tpu.core_type = #tpu.core_type<tc>, window_params = [{transform_indices = @transform_0, window_bounds = array<i64: 1, 1, 8>}, {transform_indices = @transform_1, window_bounds = array<i64: 1, 8, 32>}, {transform_indices = @transform_2, window_bounds = array<i64: 1, 4, 32, 8>}, {transform_indices = @transform_3, window_bounds = array<i64: 1, 4, 1, 8>}, {transform_indices = @transform_4, window_bounds = array<i64: 1, 4, 32, 8>}, {transform_indices = @transform_5, window_bounds = array<i64: 1, 4, 1, 8>}, {transform_indices = @transform_6, window_bounds = array<i64: 1, 4, 32, 8>}, {transform_indices = @transform_7, window_bounds = array<i64: 1, 4, 1, 8>}, {transform_indices = @transform_8, window_bounds = array<i64: 1, 4, 8, 32>}, {transform_indices = @transform_9, window_bounds = array<i64: 1, 1, 32>}, {transform_indices = @transform_10, window_bounds = array<i64: 1, 1, 32>}, {transform_indices = @transform_11, window_bounds = array<i64: 1, 1, 32>}, {transform_indices = @transform_12, window_bounds = array<i64: 1, 32, 16>}, {transform_indices = @transform_13, window_bounds = array<i64: 1, 1, 16>}, {transform_indices = @transform_14, window_bounds = array<i64: 1, 16, 32>}, {transform_indices = @transform_15, window_bounds = array<i64: 1, 1, 32>}, {transform_indices = @transform_16, window_bounds = array<i64: 1, 1, 32>}, {transform_indices = @transform_17, window_bounds = array<i64: 1, 1, 32>}, {transform_indices = @transform_18, window_bounds = array<i64: 1, 8, 32>}]} {
    %c0_i32 = arith.constant 0 : i32
    %0 = arith.cmpi eq, %arg1, %c0_i32 : i32
    %1 = arith.extui %0 : i1 to i32
    %c0_i32_0 = arith.constant 0 : i32
    %2 = arith.cmpi ne, %1, %c0_i32_0 : i32
    scf.if %2 {
      %c0_196 = arith.constant 0 : index
      %c0_197 = arith.constant 0 : index
      %c0_198 = arith.constant 0 : index
      %278 = vector.load %arg3[%c0_196, %c0_197, %c0_198] : memref<1x8x32xf32, #tpu.memory_space<vmem>>, vector<1x8x32xf32>
      %279 = vector.shape_cast %278 : vector<1x8x32xf32> to vector<8x32xf32>
      %c0_199 = arith.constant 0 : index
      %c0_200 = arith.constant 0 : index
      %280 = vector.load %arg21[%c0_199, %c0_200] : memref<8x32xf32, #tpu.memory_space<vmem>>, vector<8x32xf32>
      tpu.vector_store %arg21[%c0_199, %c0_200], %279 {strides = array<i32>} : memref<8x32xf32, #tpu.memory_space<vmem>>, vector<8x32xf32>,
    } else {
    }
    %c0 = arith.constant 0 : index
    %c0_1 = arith.constant 0 : index
    %3 = vector.load %arg21[%c0, %c0_1] : memref<8x32xf32, #tpu.memory_space<vmem>>, vector<8x32xf32>
    %4 = arith.truncf %3 : vector<8x32xf32> to vector<8x32xbf16>
    %c0_2 = arith.constant 0 : index
    %c0_3 = arith.constant 0 : index
    %c0_4 = arith.constant 0 : index
    %5 = vector.load %arg2[%c0_2, %c0_3, %c0_4] : memref<1x1x8xf32, #tpu.memory_space<vmem>>, vector<1x1x8xf32>
    %6 = vector.shape_cast %5 : vector<1x1x8xf32> to vector<1x8xf32>
    %7 = tpu.iota {dimensions = array<i32: 0>} : vector<8x8xi32>
    %8 = tpu.iota {dimensions = array<i32: 1>} : vector<8x8xi32>
    %9 = arith.cmpi sgt, %8, %7 : vector<8x8xi32>
    %cst = arith.constant 5.000000e-01 : f32
    %10 = vector.broadcast %cst : f32 to vector<1x8xf32>
    %11 = arith.cmpf ogt, %6, %10 : vector<1x8xf32>
    %12 = vector.broadcast %11 : vector<1x8xi1> to vector<8x8xi1>
    %13 = arith.ori %9, %12 : vector<8x8xi1>
    %cst_5 = arith.constant -1.000000e+09 : f32
    %cst_6 = arith.constant 0.000000e+00 : f32
    %14 = vector.broadcast %cst_5 : f32 to vector<8x8xf32>
    %15 = vector.broadcast %cst_6 : f32 to vector<8x8xf32>
    %16 = arith.select %13, %14, %15 : vector<8x8xi1>, vector<8x8xf32>
    %cst_7 = arith.constant 0.000000e+00 : f32
    %17 = vector.broadcast %cst_7 : f32 to vector<8x32xf32>
    %c0_8 = arith.constant 0 : index
    %c0_9 = arith.constant 0 : index
    %c0_10 = arith.constant 0 : index
    %c0_11 = arith.constant 0 : index
    %18 = vector.load %arg4[%c0_8, %c0_9, %c0_10, %c0_11] : memref<1x4x32x8xbf16, #tpu.memory_space<vmem>>, vector<1x1x32x8xbf16>
    %19 = vector.shape_cast %18 : vector<1x1x32x8xbf16> to vector<32x8xbf16>
    %cst_12 = arith.constant dense<0.000000e+00> : vector<8x8xf32>
    %20 = tpu.matmul %4, %19, %cst_12 {dimension_numbers = #tpu.dot_dimension_numbers<[1], [0], [0], [1], [0, 0, 1, 1], [], []>} : vector<8x32xbf16>, vector<32x8xbf16>, vector<8x8xf32> -> vector<8x8xf32>
    %c0_13 = arith.constant 0 : index
    %c0_14 = arith.constant 0 : index
    %c0_15 = arith.constant 0 : index
    %c0_16 = arith.constant 0 : index
    %21 = vector.load %arg5[%c0_13, %c0_14, %c0_15, %c0_16] : memref<1x4x1x8xf32, #tpu.memory_space<vmem>>, vector<1x1x1x8xf32>
    %22 = vector.shape_cast %21 : vector<1x1x1x8xf32> to vector<1x8xf32>
    %23 = vector.broadcast %22 : vector<1x8xf32> to vector<8x8xf32>
    %24 = arith.addf %20, %23 : vector<8x8xf32>
    %c0_17 = arith.constant 0 : index
    %c0_18 = arith.constant 0 : index
    %c0_19 = arith.constant 0 : index
    %c0_20 = arith.constant 0 : index
    %25 = vector.load %arg6[%c0_17, %c0_18, %c0_19, %c0_20] : memref<1x4x32x8xbf16, #tpu.memory_space<vmem>>, vector<1x1x32x8xbf16>
    %26 = vector.shape_cast %25 : vector<1x1x32x8xbf16> to vector<32x8xbf16>
    %cst_21 = arith.constant dense<0.000000e+00> : vector<8x8xf32>
    %27 = tpu.matmul %4, %26, %cst_21 {dimension_numbers = #tpu.dot_dimension_numbers<[1], [0], [0], [1], [0, 0, 1, 1], [], []>} : vector<8x32xbf16>, vector<32x8xbf16>, vector<8x8xf32> -> vector<8x8xf32>
    %c0_22 = arith.constant 0 : index
    %c0_23 = arith.constant 0 : index
    %c0_24 = arith.constant 0 : index
    %c0_25 = arith.constant 0 : index
    %28 = vector.load %arg7[%c0_22, %c0_23, %c0_24, %c0_25] : memref<1x4x1x8xf32, #tpu.memory_space<vmem>>, vector<1x1x1x8xf32>
    %29 = vector.shape_cast %28 : vector<1x1x1x8xf32> to vector<1x8xf32>
    %30 = vector.broadcast %29 : vector<1x8xf32> to vector<8x8xf32>
    %31 = arith.addf %27, %30 : vector<8x8xf32>
    %c0_26 = arith.constant 0 : index
    %c0_27 = arith.constant 0 : index
    %c0_28 = arith.constant 0 : index
    %c0_29 = arith.constant 0 : index
    %32 = vector.load %arg8[%c0_26, %c0_27, %c0_28, %c0_29] : memref<1x4x32x8xbf16, #tpu.memory_space<vmem>>, vector<1x1x32x8xbf16>
    %33 = vector.shape_cast %32 : vector<1x1x32x8xbf16> to vector<32x8xbf16>
    %cst_30 = arith.constant dense<0.000000e+00> : vector<8x8xf32>
    %34 = tpu.matmul %4, %33, %cst_30 {dimension_numbers = #tpu.dot_dimension_numbers<[1], [0], [0], [1], [0, 0, 1, 1], [], []>} : vector<8x32xbf16>, vector<32x8xbf16>, vector<8x8xf32> -> vector<8x8xf32>
    %c0_31 = arith.constant 0 : index
    %c0_32 = arith.constant 0 : index
    %c0_33 = arith.constant 0 : index
    %c0_34 = arith.constant 0 : index
    %35 = vector.load %arg9[%c0_31, %c0_32, %c0_33, %c0_34] : memref<1x4x1x8xf32, #tpu.memory_space<vmem>>, vector<1x1x1x8xf32>
    %36 = vector.shape_cast %35 : vector<1x1x1x8xf32> to vector<1x8xf32>
    %37 = vector.broadcast %36 : vector<1x8xf32> to vector<8x8xf32>
    %38 = arith.addf %34, %37 : vector<8x8xf32>
    %39 = arith.truncf %24 : vector<8x8xf32> to vector<8x8xbf16>
    %40 = arith.truncf %31 : vector<8x8xf32> to vector<8x8xbf16>
    %cst_35 = arith.constant dense<0.000000e+00> : vector<8x8xf32>
    %41 = tpu.matmul %39, %40, %cst_35 {dimension_numbers = #tpu.dot_dimension_numbers<[1], [1], [0], [0], [0, 0, 1, 0], [], []>} : vector<8x8xbf16>, vector<8x8xbf16>, vector<8x8xf32> -> vector<8x8xf32>
    %cst_36 = arith.constant 0.353553385 : f32
    %42 = vector.broadcast %cst_36 : f32 to vector<8x8xf32>
    %43 = arith.mulf %41, %42 : vector<8x8xf32>
    %44 = arith.addf %43, %16 : vector<8x8xf32>
    %cst_37 = arith.constant dense<0xFF800000> : vector<8xf32>
    %45 = vector.multi_reduction <maximumf>, %44, %cst_37 [1] : vector<8x8xf32> to vector<8xf32>
    %46 = vector.shape_cast %45 : vector<8xf32> to vector<8x1xf32>
    %47 = vector.broadcast %46 : vector<8x1xf32> to vector<8x8xf32>
    %48 = arith.subf %44, %47 : vector<8x8xf32>
    %49 = math.exp %48 : vector<8x8xf32>
    %cst_38 = arith.constant dense<0.000000e+00> : vector<8xf32>
    %50 = vector.multi_reduction <add>, %49, %cst_38 [1] : vector<8x8xf32> to vector<8xf32>
    %51 = vector.shape_cast %50 : vector<8xf32> to vector<8x1xf32>
    %52 = tpu.reciprocal %51 {approx = true} : vector<8x1xf32> -> vector<8x1xf32>
    %53 = vector.broadcast %52 : vector<8x1xf32> to vector<8x8xf32>
    %54 = arith.mulf %49, %53 : vector<8x8xf32>
    %55 = arith.truncf %54 : vector<8x8xf32> to vector<8x8xbf16>
    %56 = arith.truncf %38 : vector<8x8xf32> to vector<8x8xbf16>
    %cst_39 = arith.constant dense<0.000000e+00> : vector<8x8xf32>
    %57 = tpu.matmul %55, %56, %cst_39 {dimension_numbers = #tpu.dot_dimension_numbers<[1], [0], [0], [1], [0, 0, 1, 1], [], []>} : vector<8x8xbf16>, vector<8x8xbf16>, vector<8x8xf32> -> vector<8x8xf32>
    %58 = arith.truncf %57 : vector<8x8xf32> to vector<8x8xbf16>
    %c0_40 = arith.constant 0 : index
    %c0_41 = arith.constant 0 : index
    %c0_42 = arith.constant 0 : index
    %c0_43 = arith.constant 0 : index
    %59 = vector.load %arg10[%c0_40, %c0_41, %c0_42, %c0_43] : memref<1x4x8x32xbf16, #tpu.memory_space<vmem>>, vector<1x1x8x32xbf16>
    %60 = vector.shape_cast %59 : vector<1x1x8x32xbf16> to vector<8x32xbf16>
    %cst_44 = arith.constant dense<0.000000e+00> : vector<8x32xf32>
    %61 = tpu.matmul %58, %60, %cst_44 {dimension_numbers = #tpu.dot_dimension_numbers<[1], [0], [0], [1], [0, 0, 1, 1], [], []>} : vector<8x8xbf16>, vector<8x32xbf16>, vector<8x32xf32> -> vector<8x32xf32>
    %62 = arith.addf %17, %61 : vector<8x32xf32>
    %c0_45 = arith.constant 0 : index
    %c1 = arith.constant 1 : index
    %c0_46 = arith.constant 0 : index
    %c0_47 = arith.constant 0 : index
    %63 = vector.load %arg4[%c0_45, %c1, %c0_46, %c0_47] : memref<1x4x32x8xbf16, #tpu.memory_space<vmem>>, vector<1x1x32x8xbf16>
    %64 = vector.shape_cast %63 : vector<1x1x32x8xbf16> to vector<32x8xbf16>
    %cst_48 = arith.constant dense<0.000000e+00> : vector<8x8xf32>
    %65 = tpu.matmul %4, %64, %cst_48 {dimension_numbers = #tpu.dot_dimension_numbers<[1], [0], [0], [1], [0, 0, 1, 1], [], []>} : vector<8x32xbf16>, vector<32x8xbf16>, vector<8x8xf32> -> vector<8x8xf32>
    %c0_49 = arith.constant 0 : index
    %c1_50 = arith.constant 1 : index
    %c0_51 = arith.constant 0 : index
    %c0_52 = arith.constant 0 : index
    %66 = vector.load %arg5[%c0_49, %c1_50, %c0_51, %c0_52] : memref<1x4x1x8xf32, #tpu.memory_space<vmem>>, vector<1x1x1x8xf32>
    %67 = vector.shape_cast %66 : vector<1x1x1x8xf32> to vector<1x8xf32>
    %68 = vector.broadcast %67 : vector<1x8xf32> to vector<8x8xf32>
    %69 = arith.addf %65, %68 : vector<8x8xf32>
    %c0_53 = arith.constant 0 : index
    %c1_54 = arith.constant 1 : index
    %c0_55 = arith.constant 0 : index
    %c0_56 = arith.constant 0 : index
    %70 = vector.load %arg6[%c0_53, %c1_54, %c0_55, %c0_56] : memref<1x4x32x8xbf16, #tpu.memory_space<vmem>>, vector<1x1x32x8xbf16>
    %71 = vector.shape_cast %70 : vector<1x1x32x8xbf16> to vector<32x8xbf16>
    %cst_57 = arith.constant dense<0.000000e+00> : vector<8x8xf32>
    %72 = tpu.matmul %4, %71, %cst_57 {dimension_numbers = #tpu.dot_dimension_numbers<[1], [0], [0], [1], [0, 0, 1, 1], [], []>} : vector<8x32xbf16>, vector<32x8xbf16>, vector<8x8xf32> -> vector<8x8xf32>
    %c0_58 = arith.constant 0 : index
    %c1_59 = arith.constant 1 : index
    %c0_60 = arith.constant 0 : index
    %c0_61 = arith.constant 0 : index
    %73 = vector.load %arg7[%c0_58, %c1_59, %c0_60, %c0_61] : memref<1x4x1x8xf32, #tpu.memory_space<vmem>>, vector<1x1x1x8xf32>
    %74 = vector.shape_cast %73 : vector<1x1x1x8xf32> to vector<1x8xf32>
    %75 = vector.broadcast %74 : vector<1x8xf32> to vector<8x8xf32>
    %76 = arith.addf %72, %75 : vector<8x8xf32>
    %c0_62 = arith.constant 0 : index
    %c1_63 = arith.constant 1 : index
    %c0_64 = arith.constant 0 : index
    %c0_65 = arith.constant 0 : index
    %77 = vector.load %arg8[%c0_62, %c1_63, %c0_64, %c0_65] : memref<1x4x32x8xbf16, #tpu.memory_space<vmem>>, vector<1x1x32x8xbf16>
    %78 = vector.shape_cast %77 : vector<1x1x32x8xbf16> to vector<32x8xbf16>
    %cst_66 = arith.constant dense<0.000000e+00> : vector<8x8xf32>
    %79 = tpu.matmul %4, %78, %cst_66 {dimension_numbers = #tpu.dot_dimension_numbers<[1], [0], [0], [1], [0, 0, 1, 1], [], []>} : vector<8x32xbf16>, vector<32x8xbf16>, vector<8x8xf32> -> vector<8x8xf32>
    %c0_67 = arith.constant 0 : index
    %c1_68 = arith.constant 1 : index
    %c0_69 = arith.constant 0 : index
    %c0_70 = arith.constant 0 : index
    %80 = vector.load %arg9[%c0_67, %c1_68, %c0_69, %c0_70] : memref<1x4x1x8xf32, #tpu.memory_space<vmem>>, vector<1x1x1x8xf32>
    %81 = vector.shape_cast %80 : vector<1x1x1x8xf32> to vector<1x8xf32>
    %82 = vector.broadcast %81 : vector<1x8xf32> to vector<8x8xf32>
    %83 = arith.addf %79, %82 : vector<8x8xf32>
    %84 = arith.truncf %69 : vector<8x8xf32> to vector<8x8xbf16>
    %85 = arith.truncf %76 : vector<8x8xf32> to vector<8x8xbf16>
    %cst_71 = arith.constant dense<0.000000e+00> : vector<8x8xf32>
    %86 = tpu.matmul %84, %85, %cst_71 {dimension_numbers = #tpu.dot_dimension_numbers<[1], [1], [0], [0], [0, 0, 1, 0], [], []>} : vector<8x8xbf16>, vector<8x8xbf16>, vector<8x8xf32> -> vector<8x8xf32>
    %cst_72 = arith.constant 0.353553385 : f32
    %87 = vector.broadcast %cst_72 : f32 to vector<8x8xf32>
    %88 = arith.mulf %86, %87 : vector<8x8xf32>
    %89 = arith.addf %88, %16 : vector<8x8xf32>
    %cst_73 = arith.constant dense<0xFF800000> : vector<8xf32>
    %90 = vector.multi_reduction <maximumf>, %89, %cst_73 [1] : vector<8x8xf32> to vector<8xf32>
    %91 = vector.shape_cast %90 : vector<8xf32> to vector<8x1xf32>
    %92 = vector.broadcast %91 : vector<8x1xf32> to vector<8x8xf32>
    %93 = arith.subf %89, %92 : vector<8x8xf32>
    %94 = math.exp %93 : vector<8x8xf32>
    %cst_74 = arith.constant dense<0.000000e+00> : vector<8xf32>
    %95 = vector.multi_reduction <add>, %94, %cst_74 [1] : vector<8x8xf32> to vector<8xf32>
    %96 = vector.shape_cast %95 : vector<8xf32> to vector<8x1xf32>
    %97 = tpu.reciprocal %96 {approx = true} : vector<8x1xf32> -> vector<8x1xf32>
    %98 = vector.broadcast %97 : vector<8x1xf32> to vector<8x8xf32>
    %99 = arith.mulf %94, %98 : vector<8x8xf32>
    %100 = arith.truncf %99 : vector<8x8xf32> to vector<8x8xbf16>
    %101 = arith.truncf %83 : vector<8x8xf32> to vector<8x8xbf16>
    %cst_75 = arith.constant dense<0.000000e+00> : vector<8x8xf32>
    %102 = tpu.matmul %100, %101, %cst_75 {dimension_numbers = #tpu.dot_dimension_numbers<[1], [0], [0], [1], [0, 0, 1, 1], [], []>} : vector<8x8xbf16>, vector<8x8xbf16>, vector<8x8xf32> -> vector<8x8xf32>
    %103 = arith.truncf %102 : vector<8x8xf32> to vector<8x8xbf16>
    %c0_76 = arith.constant 0 : index
    %c1_77 = arith.constant 1 : index
    %c0_78 = arith.constant 0 : index
    %c0_79 = arith.constant 0 : index
    %104 = vector.load %arg10[%c0_76, %c1_77, %c0_78, %c0_79] : memref<1x4x8x32xbf16, #tpu.memory_space<vmem>>, vector<1x1x8x32xbf16>
    %105 = vector.shape_cast %104 : vector<1x1x8x32xbf16> to vector<8x32xbf16>
    %cst_80 = arith.constant dense<0.000000e+00> : vector<8x32xf32>
    %106 = tpu.matmul %103, %105, %cst_80 {dimension_numbers = #tpu.dot_dimension_numbers<[1], [0], [0], [1], [0, 0, 1, 1], [], []>} : vector<8x8xbf16>, vector<8x32xbf16>, vector<8x32xf32> -> vector<8x32xf32>
    %107 = arith.addf %62, %106 : vector<8x32xf32>
    %c0_81 = arith.constant 0 : index
    %c2 = arith.constant 2 : index
    %c0_82 = arith.constant 0 : index
    %c0_83 = arith.constant 0 : index
    %108 = vector.load %arg4[%c0_81, %c2, %c0_82, %c0_83] : memref<1x4x32x8xbf16, #tpu.memory_space<vmem>>, vector<1x1x32x8xbf16>
    %109 = vector.shape_cast %108 : vector<1x1x32x8xbf16> to vector<32x8xbf16>
    %cst_84 = arith.constant dense<0.000000e+00> : vector<8x8xf32>
    %110 = tpu.matmul %4, %109, %cst_84 {dimension_numbers = #tpu.dot_dimension_numbers<[1], [0], [0], [1], [0, 0, 1, 1], [], []>} : vector<8x32xbf16>, vector<32x8xbf16>, vector<8x8xf32> -> vector<8x8xf32>
    %c0_85 = arith.constant 0 : index
    %c2_86 = arith.constant 2 : index
    %c0_87 = arith.constant 0 : index
    %c0_88 = arith.constant 0 : index
    %111 = vector.load %arg5[%c0_85, %c2_86, %c0_87, %c0_88] : memref<1x4x1x8xf32, #tpu.memory_space<vmem>>, vector<1x1x1x8xf32>
    %112 = vector.shape_cast %111 : vector<1x1x1x8xf32> to vector<1x8xf32>
    %113 = vector.broadcast %112 : vector<1x8xf32> to vector<8x8xf32>
    %114 = arith.addf %110, %113 : vector<8x8xf32>
    %c0_89 = arith.constant 0 : index
    %c2_90 = arith.constant 2 : index
    %c0_91 = arith.constant 0 : index
    %c0_92 = arith.constant 0 : index
    %115 = vector.load %arg6[%c0_89, %c2_90, %c0_91, %c0_92] : memref<1x4x32x8xbf16, #tpu.memory_space<vmem>>, vector<1x1x32x8xbf16>
    %116 = vector.shape_cast %115 : vector<1x1x32x8xbf16> to vector<32x8xbf16>
    %cst_93 = arith.constant dense<0.000000e+00> : vector<8x8xf32>
    %117 = tpu.matmul %4, %116, %cst_93 {dimension_numbers = #tpu.dot_dimension_numbers<[1], [0], [0], [1], [0, 0, 1, 1], [], []>} : vector<8x32xbf16>, vector<32x8xbf16>, vector<8x8xf32> -> vector<8x8xf32>
    %c0_94 = arith.constant 0 : index
    %c2_95 = arith.constant 2 : index
    %c0_96 = arith.constant 0 : index
    %c0_97 = arith.constant 0 : index
    %118 = vector.load %arg7[%c0_94, %c2_95, %c0_96, %c0_97] : memref<1x4x1x8xf32, #tpu.memory_space<vmem>>, vector<1x1x1x8xf32>
    %119 = vector.shape_cast %118 : vector<1x1x1x8xf32> to vector<1x8xf32>
    %120 = vector.broadcast %119 : vector<1x8xf32> to vector<8x8xf32>
    %121 = arith.addf %117, %120 : vector<8x8xf32>
    %c0_98 = arith.constant 0 : index
    %c2_99 = arith.constant 2 : index
    %c0_100 = arith.constant 0 : index
    %c0_101 = arith.constant 0 : index
    %122 = vector.load %arg8[%c0_98, %c2_99, %c0_100, %c0_101] : memref<1x4x32x8xbf16, #tpu.memory_space<vmem>>, vector<1x1x32x8xbf16>
    %123 = vector.shape_cast %122 : vector<1x1x32x8xbf16> to vector<32x8xbf16>
    %cst_102 = arith.constant dense<0.000000e+00> : vector<8x8xf32>
    %124 = tpu.matmul %4, %123, %cst_102 {dimension_numbers = #tpu.dot_dimension_numbers<[1], [0], [0], [1], [0, 0, 1, 1], [], []>} : vector<8x32xbf16>, vector<32x8xbf16>, vector<8x8xf32> -> vector<8x8xf32>
    %c0_103 = arith.constant 0 : index
    %c2_104 = arith.constant 2 : index
    %c0_105 = arith.constant 0 : index
    %c0_106 = arith.constant 0 : index
    %125 = vector.load %arg9[%c0_103, %c2_104, %c0_105, %c0_106] : memref<1x4x1x8xf32, #tpu.memory_space<vmem>>, vector<1x1x1x8xf32>
    %126 = vector.shape_cast %125 : vector<1x1x1x8xf32> to vector<1x8xf32>
    %127 = vector.broadcast %126 : vector<1x8xf32> to vector<8x8xf32>
    %128 = arith.addf %124, %127 : vector<8x8xf32>
    %129 = arith.truncf %114 : vector<8x8xf32> to vector<8x8xbf16>
    %130 = arith.truncf %121 : vector<8x8xf32> to vector<8x8xbf16>
    %cst_107 = arith.constant dense<0.000000e+00> : vector<8x8xf32>
    %131 = tpu.matmul %129, %130, %cst_107 {dimension_numbers = #tpu.dot_dimension_numbers<[1], [1], [0], [0], [0, 0, 1, 0], [], []>} : vector<8x8xbf16>, vector<8x8xbf16>, vector<8x8xf32> -> vector<8x8xf32>
    %cst_108 = arith.constant 0.353553385 : f32
    %132 = vector.broadcast %cst_108 : f32 to vector<8x8xf32>
    %133 = arith.mulf %131, %132 : vector<8x8xf32>
    %134 = arith.addf %133, %16 : vector<8x8xf32>
    %cst_109 = arith.constant dense<0xFF800000> : vector<8xf32>
    %135 = vector.multi_reduction <maximumf>, %134, %cst_109 [1] : vector<8x8xf32> to vector<8xf32>
    %136 = vector.shape_cast %135 : vector<8xf32> to vector<8x1xf32>
    %137 = vector.broadcast %136 : vector<8x1xf32> to vector<8x8xf32>
    %138 = arith.subf %134, %137 : vector<8x8xf32>
    %139 = math.exp %138 : vector<8x8xf32>
    %cst_110 = arith.constant dense<0.000000e+00> : vector<8xf32>
    %140 = vector.multi_reduction <add>, %139, %cst_110 [1] : vector<8x8xf32> to vector<8xf32>
    %141 = vector.shape_cast %140 : vector<8xf32> to vector<8x1xf32>
    %142 = tpu.reciprocal %141 {approx = true} : vector<8x1xf32> -> vector<8x1xf32>
    %143 = vector.broadcast %142 : vector<8x1xf32> to vector<8x8xf32>
    %144 = arith.mulf %139, %143 : vector<8x8xf32>
    %145 = arith.truncf %144 : vector<8x8xf32> to vector<8x8xbf16>
    %146 = arith.truncf %128 : vector<8x8xf32> to vector<8x8xbf16>
    %cst_111 = arith.constant dense<0.000000e+00> : vector<8x8xf32>
    %147 = tpu.matmul %145, %146, %cst_111 {dimension_numbers = #tpu.dot_dimension_numbers<[1], [0], [0], [1], [0, 0, 1, 1], [], []>} : vector<8x8xbf16>, vector<8x8xbf16>, vector<8x8xf32> -> vector<8x8xf32>
    %148 = arith.truncf %147 : vector<8x8xf32> to vector<8x8xbf16>
    %c0_112 = arith.constant 0 : index
    %c2_113 = arith.constant 2 : index
    %c0_114 = arith.constant 0 : index
    %c0_115 = arith.constant 0 : index
    %149 = vector.load %arg10[%c0_112, %c2_113, %c0_114, %c0_115] : memref<1x4x8x32xbf16, #tpu.memory_space<vmem>>, vector<1x1x8x32xbf16>
    %150 = vector.shape_cast %149 : vector<1x1x8x32xbf16> to vector<8x32xbf16>
    %cst_116 = arith.constant dense<0.000000e+00> : vector<8x32xf32>
    %151 = tpu.matmul %148, %150, %cst_116 {dimension_numbers = #tpu.dot_dimension_numbers<[1], [0], [0], [1], [0, 0, 1, 1], [], []>} : vector<8x8xbf16>, vector<8x32xbf16>, vector<8x32xf32> -> vector<8x32xf32>
    %152 = arith.addf %107, %151 : vector<8x32xf32>
    %c0_117 = arith.constant 0 : index
    %c3 = arith.constant 3 : index
    %c0_118 = arith.constant 0 : index
    %c0_119 = arith.constant 0 : index
    %153 = vector.load %arg4[%c0_117, %c3, %c0_118, %c0_119] : memref<1x4x32x8xbf16, #tpu.memory_space<vmem>>, vector<1x1x32x8xbf16>
    %154 = vector.shape_cast %153 : vector<1x1x32x8xbf16> to vector<32x8xbf16>
    %cst_120 = arith.constant dense<0.000000e+00> : vector<8x8xf32>
    %155 = tpu.matmul %4, %154, %cst_120 {dimension_numbers = #tpu.dot_dimension_numbers<[1], [0], [0], [1], [0, 0, 1, 1], [], []>} : vector<8x32xbf16>, vector<32x8xbf16>, vector<8x8xf32> -> vector<8x8xf32>
    %c0_121 = arith.constant 0 : index
    %c3_122 = arith.constant 3 : index
    %c0_123 = arith.constant 0 : index
    %c0_124 = arith.constant 0 : index
    %156 = vector.load %arg5[%c0_121, %c3_122, %c0_123, %c0_124] : memref<1x4x1x8xf32, #tpu.memory_space<vmem>>, vector<1x1x1x8xf32>
    %157 = vector.shape_cast %156 : vector<1x1x1x8xf32> to vector<1x8xf32>
    %158 = vector.broadcast %157 : vector<1x8xf32> to vector<8x8xf32>
    %159 = arith.addf %155, %158 : vector<8x8xf32>
    %c0_125 = arith.constant 0 : index
    %c3_126 = arith.constant 3 : index
    %c0_127 = arith.constant 0 : index
    %c0_128 = arith.constant 0 : index
    %160 = vector.load %arg6[%c0_125, %c3_126, %c0_127, %c0_128] : memref<1x4x32x8xbf16, #tpu.memory_space<vmem>>, vector<1x1x32x8xbf16>
    %161 = vector.shape_cast %160 : vector<1x1x32x8xbf16> to vector<32x8xbf16>
    %cst_129 = arith.constant dense<0.000000e+00> : vector<8x8xf32>
    %162 = tpu.matmul %4, %161, %cst_129 {dimension_numbers = #tpu.dot_dimension_numbers<[1], [0], [0], [1], [0, 0, 1, 1], [], []>} : vector<8x32xbf16>, vector<32x8xbf16>, vector<8x8xf32> -> vector<8x8xf32>
    %c0_130 = arith.constant 0 : index
    %c3_131 = arith.constant 3 : index
    %c0_132 = arith.constant 0 : index
    %c0_133 = arith.constant 0 : index
    %163 = vector.load %arg7[%c0_130, %c3_131, %c0_132, %c0_133] : memref<1x4x1x8xf32, #tpu.memory_space<vmem>>, vector<1x1x1x8xf32>
    %164 = vector.shape_cast %163 : vector<1x1x1x8xf32> to vector<1x8xf32>
    %165 = vector.broadcast %164 : vector<1x8xf32> to vector<8x8xf32>
    %166 = arith.addf %162, %165 : vector<8x8xf32>
    %c0_134 = arith.constant 0 : index
    %c3_135 = arith.constant 3 : index
    %c0_136 = arith.constant 0 : index
    %c0_137 = arith.constant 0 : index
    %167 = vector.load %arg8[%c0_134, %c3_135, %c0_136, %c0_137] : memref<1x4x32x8xbf16, #tpu.memory_space<vmem>>, vector<1x1x32x8xbf16>
    %168 = vector.shape_cast %167 : vector<1x1x32x8xbf16> to vector<32x8xbf16>
    %cst_138 = arith.constant dense<0.000000e+00> : vector<8x8xf32>
    %169 = tpu.matmul %4, %168, %cst_138 {dimension_numbers = #tpu.dot_dimension_numbers<[1], [0], [0], [1], [0, 0, 1, 1], [], []>} : vector<8x32xbf16>, vector<32x8xbf16>, vector<8x8xf32> -> vector<8x8xf32>
    %c0_139 = arith.constant 0 : index
    %c3_140 = arith.constant 3 : index
    %c0_141 = arith.constant 0 : index
    %c0_142 = arith.constant 0 : index
    %170 = vector.load %arg9[%c0_139, %c3_140, %c0_141, %c0_142] : memref<1x4x1x8xf32, #tpu.memory_space<vmem>>, vector<1x1x1x8xf32>
    %171 = vector.shape_cast %170 : vector<1x1x1x8xf32> to vector<1x8xf32>
    %172 = vector.broadcast %171 : vector<1x8xf32> to vector<8x8xf32>
    %173 = arith.addf %169, %172 : vector<8x8xf32>
    %174 = arith.truncf %159 : vector<8x8xf32> to vector<8x8xbf16>
    %175 = arith.truncf %166 : vector<8x8xf32> to vector<8x8xbf16>
    %cst_143 = arith.constant dense<0.000000e+00> : vector<8x8xf32>
    %176 = tpu.matmul %174, %175, %cst_143 {dimension_numbers = #tpu.dot_dimension_numbers<[1], [1], [0], [0], [0, 0, 1, 0], [], []>} : vector<8x8xbf16>, vector<8x8xbf16>, vector<8x8xf32> -> vector<8x8xf32>
    %cst_144 = arith.constant 0.353553385 : f32
    %177 = vector.broadcast %cst_144 : f32 to vector<8x8xf32>
    %178 = arith.mulf %176, %177 : vector<8x8xf32>
    %179 = arith.addf %178, %16 : vector<8x8xf32>
    %cst_145 = arith.constant dense<0xFF800000> : vector<8xf32>
    %180 = vector.multi_reduction <maximumf>, %179, %cst_145 [1] : vector<8x8xf32> to vector<8xf32>
    %181 = vector.shape_cast %180 : vector<8xf32> to vector<8x1xf32>
    %182 = vector.broadcast %181 : vector<8x1xf32> to vector<8x8xf32>
    %183 = arith.subf %179, %182 : vector<8x8xf32>
    %184 = math.exp %183 : vector<8x8xf32>
    %cst_146 = arith.constant dense<0.000000e+00> : vector<8xf32>
    %185 = vector.multi_reduction <add>, %184, %cst_146 [1] : vector<8x8xf32> to vector<8xf32>
    %186 = vector.shape_cast %185 : vector<8xf32> to vector<8x1xf32>
    %187 = tpu.reciprocal %186 {approx = true} : vector<8x1xf32> -> vector<8x1xf32>
    %188 = vector.broadcast %187 : vector<8x1xf32> to vector<8x8xf32>
    %189 = arith.mulf %184, %188 : vector<8x8xf32>
    %190 = arith.truncf %189 : vector<8x8xf32> to vector<8x8xbf16>
    %191 = arith.truncf %173 : vector<8x8xf32> to vector<8x8xbf16>
    %cst_147 = arith.constant dense<0.000000e+00> : vector<8x8xf32>
    %192 = tpu.matmul %190, %191, %cst_147 {dimension_numbers = #tpu.dot_dimension_numbers<[1], [0], [0], [1], [0, 0, 1, 1], [], []>} : vector<8x8xbf16>, vector<8x8xbf16>, vector<8x8xf32> -> vector<8x8xf32>
    %193 = arith.truncf %192 : vector<8x8xf32> to vector<8x8xbf16>
    %c0_148 = arith.constant 0 : index
    %c3_149 = arith.constant 3 : index
    %c0_150 = arith.constant 0 : index
    %c0_151 = arith.constant 0 : index
    %194 = vector.load %arg10[%c0_148, %c3_149, %c0_150, %c0_151] : memref<1x4x8x32xbf16, #tpu.memory_space<vmem>>, vector<1x1x8x32xbf16>
    %195 = vector.shape_cast %194 : vector<1x1x8x32xbf16> to vector<8x32xbf16>
    %cst_152 = arith.constant dense<0.000000e+00> : vector<8x32xf32>
    %196 = tpu.matmul %193, %195, %cst_152 {dimension_numbers = #tpu.dot_dimension_numbers<[1], [0], [0], [1], [0, 0, 1, 1], [], []>} : vector<8x8xbf16>, vector<8x32xbf16>, vector<8x32xf32> -> vector<8x32xf32>
    %197 = arith.addf %152, %196 : vector<8x32xf32>
    %c0_153 = arith.constant 0 : index
    %c0_154 = arith.constant 0 : index
    %c0_155 = arith.constant 0 : index
    %198 = vector.load %arg11[%c0_153, %c0_154, %c0_155] : memref<1x1x32xf32, #tpu.memory_space<vmem>>, vector<1x1x32xf32>
    %199 = vector.shape_cast %198 : vector<1x1x32xf32> to vector<1x32xf32>
    %200 = vector.broadcast %199 : vector<1x32xf32> to vector<8x32xf32>
    %201 = arith.addf %197, %200 : vector<8x32xf32>
    %202 = arith.addf %3, %201 : vector<8x32xf32>
    %c0_156 = arith.constant 0 : index
    %c0_157 = arith.constant 0 : index
    %c0_158 = arith.constant 0 : index
    %203 = vector.load %arg12[%c0_156, %c0_157, %c0_158] : memref<1x1x32xf32, #tpu.memory_space<vmem>>, vector<1x1x32xf32>
    %204 = vector.shape_cast %203 : vector<1x1x32xf32> to vector<1x32xf32>
    %c0_159 = arith.constant 0 : index
    %c0_160 = arith.constant 0 : index
    %c0_161 = arith.constant 0 : index
    %205 = vector.load %arg13[%c0_159, %c0_160, %c0_161] : memref<1x1x32xf32, #tpu.memory_space<vmem>>, vector<1x1x32xf32>
    %206 = vector.shape_cast %205 : vector<1x1x32xf32> to vector<1x32xf32>
    %cst_162 = arith.constant dense<0.000000e+00> : vector<8xf32>
    %207 = vector.multi_reduction <add>, %202, %cst_162 [1] : vector<8x32xf32> to vector<8xf32>
    %208 = vector.shape_cast %207 : vector<8xf32> to vector<8x1xf32>
    %cst_163 = arith.constant 3.200000e+01 : f32
    %209 = vector.broadcast %cst_163 : f32 to vector<8x1xf32>
    %210 = arith.divf %208, %209 : vector<8x1xf32>
    %211 = vector.broadcast %210 : vector<8x1xf32> to vector<8x32xf32>
    %212 = arith.subf %202, %211 : vector<8x32xf32>
    %213 = arith.mulf %212, %212 : vector<8x32xf32>
    %cst_164 = arith.constant dense<0.000000e+00> : vector<8xf32>
    %214 = vector.multi_reduction <add>, %213, %cst_164 [1] : vector<8x32xf32> to vector<8xf32>
    %215 = vector.shape_cast %214 : vector<8xf32> to vector<8x1xf32>
    %cst_165 = arith.constant 3.200000e+01 : f32
    %216 = vector.broadcast %cst_165 : f32 to vector<8x1xf32>
    %217 = arith.divf %215, %216 : vector<8x1xf32>
    %218 = vector.broadcast %210 : vector<8x1xf32> to vector<8x32xf32>
    %219 = arith.subf %202, %218 : vector<8x32xf32>
    %cst_166 = arith.constant 9.99999974E-6 : f32
    %220 = vector.broadcast %cst_166 : f32 to vector<8x1xf32>
    %221 = arith.addf %217, %220 : vector<8x1xf32>
    %222 = math.rsqrt %221 : vector<8x1xf32>
    %223 = vector.broadcast %222 : vector<8x1xf32> to vector<8x32xf32>
    %224 = arith.mulf %219, %223 : vector<8x32xf32>
    %225 = vector.broadcast %204 : vector<1x32xf32> to vector<8x32xf32>
    %226 = arith.mulf %224, %225 : vector<8x32xf32>
    %227 = vector.broadcast %206 : vector<1x32xf32> to vector<8x32xf32>
    %228 = arith.addf %226, %227 : vector<8x32xf32>
    %229 = arith.truncf %228 : vector<8x32xf32> to vector<8x32xbf16>
    %c0_167 = arith.constant 0 : index
    %c0_168 = arith.constant 0 : index
    %c0_169 = arith.constant 0 : index
    %230 = vector.load %arg14[%c0_167, %c0_168, %c0_169] : memref<1x32x16xbf16, #tpu.memory_space<vmem>>, vector<1x32x16xbf16>
    %231 = vector.shape_cast %230 : vector<1x32x16xbf16> to vector<32x16xbf16>
    %cst_170 = arith.constant dense<0.000000e+00> : vector<8x16xf32>
    %232 = tpu.matmul %229, %231, %cst_170 {dimension_numbers = #tpu.dot_dimension_numbers<[1], [0], [0], [1], [0, 0, 1, 1], [], []>} : vector<8x32xbf16>, vector<32x16xbf16>, vector<8x16xf32> -> vector<8x16xf32>
    %c0_171 = arith.constant 0 : index
    %c0_172 = arith.constant 0 : index
    %c0_173 = arith.constant 0 : index
    %233 = vector.load %arg15[%c0_171, %c0_172, %c0_173] : memref<1x1x16xf32, #tpu.memory_space<vmem>>, vector<1x1x16xf32>
    %234 = vector.shape_cast %233 : vector<1x1x16xf32> to vector<1x16xf32>
    %235 = vector.broadcast %234 : vector<1x16xf32> to vector<8x16xf32>
    %236 = arith.addf %232, %235 : vector<8x16xf32>
    %cst_174 = arith.constant 0.000000e+00 : f32
    %237 = vector.broadcast %cst_174 : f32 to vector<8x16xf32>
    %238 = arith.maximumf %236, %237 : vector<8x16xf32>
    %239 = arith.truncf %238 : vector<8x16xf32> to vector<8x16xbf16>
    %c0_175 = arith.constant 0 : index
    %c0_176 = arith.constant 0 : index
    %c0_177 = arith.constant 0 : index
    %240 = vector.load %arg16[%c0_175, %c0_176, %c0_177] : memref<1x16x32xbf16, #tpu.memory_space<vmem>>, vector<1x16x32xbf16>
    %241 = vector.shape_cast %240 : vector<1x16x32xbf16> to vector<16x32xbf16>
    %cst_178 = arith.constant dense<0.000000e+00> : vector<8x32xf32>
    %242 = tpu.matmul %239, %241, %cst_178 {dimension_numbers = #tpu.dot_dimension_numbers<[1], [0], [0], [1], [0, 0, 1, 1], [], []>} : vector<8x16xbf16>, vector<16x32xbf16>, vector<8x32xf32> -> vector<8x32xf32>
    %c0_179 = arith.constant 0 : index
    %c0_180 = arith.constant 0 : index
    %c0_181 = arith.constant 0 : index
    %243 = vector.load %arg17[%c0_179, %c0_180, %c0_181] : memref<1x1x32xf32, #tpu.memory_space<vmem>>, vector<1x1x32xf32>
    %244 = vector.shape_cast %243 : vector<1x1x32xf32> to vector<1x32xf32>
    %245 = vector.broadcast %244 : vector<1x32xf32> to vector<8x32xf32>
    %246 = arith.addf %242, %245 : vector<8x32xf32>
    %247 = arith.addf %228, %246 : vector<8x32xf32>
    %c0_182 = arith.constant 0 : index
    %c0_183 = arith.constant 0 : index
    %c0_184 = arith.constant 0 : index
    %248 = vector.load %arg18[%c0_182, %c0_183, %c0_184] : memref<1x1x32xf32, #tpu.memory_space<vmem>>, vector<1x1x32xf32>
    %249 = vector.shape_cast %248 : vector<1x1x32xf32> to vector<1x32xf32>
    %c0_185 = arith.constant 0 : index
    %c0_186 = arith.constant 0 : index
    %c0_187 = arith.constant 0 : index
    %250 = vector.load %arg19[%c0_185, %c0_186, %c0_187] : memref<1x1x32xf32, #tpu.memory_space<vmem>>, vector<1x1x32xf32>
    %251 = vector.shape_cast %250 : vector<1x1x32xf32> to vector<1x32xf32>
    %cst_188 = arith.constant dense<0.000000e+00> : vector<8xf32>
    %252 = vector.multi_reduction <add>, %247, %cst_188 [1] : vector<8x32xf32> to vector<8xf32>
    %253 = vector.shape_cast %252 : vector<8xf32> to vector<8x1xf32>
    %cst_189 = arith.constant 3.200000e+01 : f32
    %254 = vector.broadcast %cst_189 : f32 to vector<8x1xf32>
    %255 = arith.divf %253, %254 : vector<8x1xf32>
    %256 = vector.broadcast %255 : vector<8x1xf32> to vector<8x32xf32>
    %257 = arith.subf %247, %256 : vector<8x32xf32>
    %258 = arith.mulf %257, %257 : vector<8x32xf32>
    %cst_190 = arith.constant dense<0.000000e+00> : vector<8xf32>
    %259 = vector.multi_reduction <add>, %258, %cst_190 [1] : vector<8x32xf32> to vector<8xf32>
    %260 = vector.shape_cast %259 : vector<8xf32> to vector<8x1xf32>
    %cst_191 = arith.constant 3.200000e+01 : f32
    %261 = vector.broadcast %cst_191 : f32 to vector<8x1xf32>
    %262 = arith.divf %260, %261 : vector<8x1xf32>
    %263 = vector.broadcast %255 : vector<8x1xf32> to vector<8x32xf32>
    %264 = arith.subf %247, %263 : vector<8x32xf32>
    %cst_192 = arith.constant 9.99999974E-6 : f32
    %265 = vector.broadcast %cst_192 : f32 to vector<8x1xf32>
    %266 = arith.addf %262, %265 : vector<8x1xf32>
    %267 = math.rsqrt %266 : vector<8x1xf32>
    %268 = vector.broadcast %267 : vector<8x1xf32> to vector<8x32xf32>
    %269 = arith.mulf %264, %268 : vector<8x32xf32>
    %270 = vector.broadcast %249 : vector<1x32xf32> to vector<8x32xf32>
    %271 = arith.mulf %269, %270 : vector<8x32xf32>
    %272 = vector.broadcast %251 : vector<1x32xf32> to vector<8x32xf32>
    %273 = arith.addf %271, %272 : vector<8x32xf32>
    %c0_193 = arith.constant 0 : index
    %c0_194 = arith.constant 0 : index
    %274 = vector.load %arg21[%c0_193, %c0_194] : memref<8x32xf32, #tpu.memory_space<vmem>>, vector<8x32xf32>
    tpu.vector_store %arg21[%c0_193, %c0_194], %273 {strides = array<i32>} : memref<8x32xf32, #tpu.memory_space<vmem>>, vector<8x32xf32>,
    %c1_i32 = arith.constant 1 : i32
    %275 = arith.cmpi eq, %arg1, %c1_i32 : i32
    %276 = arith.extui %275 : i1 to i32
    %c0_i32_195 = arith.constant 0 : i32
    %277 = arith.cmpi ne, %276, %c0_i32_195 : i32
    scf.if %277 {
      %c0_196 = arith.constant 0 : index
      %c0_197 = arith.constant 0 : index
      %c0_198 = arith.constant 0 : index
      %278 = vector.load %arg20[%c0_196, %c0_197, %c0_198] : memref<1x8x32xf32, #tpu.memory_space<vmem>>, vector<1x8x32xf32>
      %279 = vector.shape_cast %278 : vector<1x8x32xf32> to vector<8x32xf32>
      %280 = vector.shape_cast %273 : vector<8x32xf32> to vector<1x8x32xf32>
      tpu.vector_store %arg20[%c0_196, %c0_197, %c0_198], %280 {strides = array<i32>} : memref<1x8x32xf32, #tpu.memory_space<vmem>>, vector<1x8x32xf32>,
    } else {
    }
    return
  }
  func.func @transform_0(%arg0: i32, %arg1: i32) -> (i32, i32, i32) {
    %c0_i32 = arith.constant 0 : i32
    %c0_i32_0 = arith.constant 0 : i32
    %c0_i32_1 = arith.constant 0 : i32
    return %arg0, %c0_i32, %c0_i32_0 : i32, i32, i32
  }
  func.func @transform_1(%arg0: i32, %arg1: i32) -> (i32, i32, i32) {
    %c0_i32 = arith.constant 0 : i32
    %c0_i32_0 = arith.constant 0 : i32
    %c0_i32_1 = arith.constant 0 : i32
    return %arg0, %c0_i32, %c0_i32_0 : i32, i32, i32
  }
  func.func @transform_2(%arg0: i32, %arg1: i32) -> (i32, i32, i32, i32) {
    %c0_i32 = arith.constant 0 : i32
    %c0_i32_0 = arith.constant 0 : i32
    %c0_i32_1 = arith.constant 0 : i32
    %c0_i32_2 = arith.constant 0 : i32
    return %arg1, %c0_i32, %c0_i32_0, %c0_i32_1 : i32, i32, i32, i32
  }
  func.func @transform_3(%arg0: i32, %arg1: i32) -> (i32, i32, i32, i32) {
    %c0_i32 = arith.constant 0 : i32
    %c0_i32_0 = arith.constant 0 : i32
    %c0_i32_1 = arith.constant 0 : i32
    %c0_i32_2 = arith.constant 0 : i32
    return %arg1, %c0_i32, %c0_i32_0, %c0_i32_1 : i32, i32, i32, i32
  }
  func.func @transform_4(%arg0: i32, %arg1: i32) -> (i32, i32, i32, i32) {
    %c0_i32 = arith.constant 0 : i32
    %c0_i32_0 = arith.constant 0 : i32
    %c0_i32_1 = arith.constant 0 : i32
    %c0_i32_2 = arith.constant 0 : i32
    return %arg1, %c0_i32, %c0_i32_0, %c0_i32_1 : i32, i32, i32, i32
  }
  func.func @transform_5(%arg0: i32, %arg1: i32) -> (i32, i32, i32, i32) {
    %c0_i32 = arith.constant 0 : i32
    %c0_i32_0 = arith.constant 0 : i32
    %c0_i32_1 = arith.constant 0 : i32
    %c0_i32_2 = arith.constant 0 : i32
    return %arg1, %c0_i32, %c0_i32_0, %c0_i32_1 : i32, i32, i32, i32
  }
  func.func @transform_6(%arg0: i32, %arg1: i32) -> (i32, i32, i32, i32) {
    %c0_i32 = arith.constant 0 : i32
    %c0_i32_0 = arith.constant 0 : i32
    %c0_i32_1 = arith.constant 0 : i32
    %c0_i32_2 = arith.constant 0 : i32
    return %arg1, %c0_i32, %c0_i32_0, %c0_i32_1 : i32, i32, i32, i32
  }
  func.func @transform_7(%arg0: i32, %arg1: i32) -> (i32, i32, i32, i32) {
    %c0_i32 = arith.constant 0 : i32
    %c0_i32_0 = arith.constant 0 : i32
    %c0_i32_1 = arith.constant 0 : i32
    %c0_i32_2 = arith.constant 0 : i32
    return %arg1, %c0_i32, %c0_i32_0, %c0_i32_1 : i32, i32, i32, i32
  }
  func.func @transform_8(%arg0: i32, %arg1: i32) -> (i32, i32, i32, i32) {
    %c0_i32 = arith.constant 0 : i32
    %c0_i32_0 = arith.constant 0 : i32
    %c0_i32_1 = arith.constant 0 : i32
    %c0_i32_2 = arith.constant 0 : i32
    return %arg1, %c0_i32, %c0_i32_0, %c0_i32_1 : i32, i32, i32, i32
  }
  func.func @transform_9(%arg0: i32, %arg1: i32) -> (i32, i32, i32) {
    %c0_i32 = arith.constant 0 : i32
    %c0_i32_0 = arith.constant 0 : i32
    %c0_i32_1 = arith.constant 0 : i32
    return %arg1, %c0_i32, %c0_i32_0 : i32, i32, i32
  }
  func.func @transform_10(%arg0: i32, %arg1: i32) -> (i32, i32, i32) {
    %c0_i32 = arith.constant 0 : i32
    %c0_i32_0 = arith.constant 0 : i32
    %c0_i32_1 = arith.constant 0 : i32
    return %arg1, %c0_i32, %c0_i32_0 : i32, i32, i32
  }
  func.func @transform_11(%arg0: i32, %arg1: i32) -> (i32, i32, i32) {
    %c0_i32 = arith.constant 0 : i32
    %c0_i32_0 = arith.constant 0 : i32
    %c0_i32_1 = arith.constant 0 : i32
    return %arg1, %c0_i32, %c0_i32_0 : i32, i32, i32
  }
  func.func @transform_12(%arg0: i32, %arg1: i32) -> (i32, i32, i32) {
    %c0_i32 = arith.constant 0 : i32
    %c0_i32_0 = arith.constant 0 : i32
    %c0_i32_1 = arith.constant 0 : i32
    return %arg1, %c0_i32, %c0_i32_0 : i32, i32, i32
  }
  func.func @transform_13(%arg0: i32, %arg1: i32) -> (i32, i32, i32) {
    %c0_i32 = arith.constant 0 : i32
    %c0_i32_0 = arith.constant 0 : i32
    %c0_i32_1 = arith.constant 0 : i32
    return %arg1, %c0_i32, %c0_i32_0 : i32, i32, i32
  }
  func.func @transform_14(%arg0: i32, %arg1: i32) -> (i32, i32, i32) {
    %c0_i32 = arith.constant 0 : i32
    %c0_i32_0 = arith.constant 0 : i32
    %c0_i32_1 = arith.constant 0 : i32
    return %arg1, %c0_i32, %c0_i32_0 : i32, i32, i32
  }
  func.func @transform_15(%arg0: i32, %arg1: i32) -> (i32, i32, i32) {
    %c0_i32 = arith.constant 0 : i32
    %c0_i32_0 = arith.constant 0 : i32
    %c0_i32_1 = arith.constant 0 : i32
    return %arg1, %c0_i32, %c0_i32_0 : i32, i32, i32
  }
  func.func @transform_16(%arg0: i32, %arg1: i32) -> (i32, i32, i32) {
    %c0_i32 = arith.constant 0 : i32
    %c0_i32_0 = arith.constant 0 : i32
    %c0_i32_1 = arith.constant 0 : i32
    return %arg1, %c0_i32, %c0_i32_0 : i32, i32, i32
  }
  func.func @transform_17(%arg0: i32, %arg1: i32) -> (i32, i32, i32) {
    %c0_i32 = arith.constant 0 : i32
    %c0_i32_0 = arith.constant 0 : i32
    %c0_i32_1 = arith.constant 0 : i32
    return %arg1, %c0_i32, %c0_i32_0 : i32, i32, i32
  }
  func.func @transform_18(%arg0: i32, %arg1: i32) -> (i32, i32, i32) {
    %c0_i32 = arith.constant 0 : i32
    %c0_i32_0 = arith.constant 0 : i32
    %c0_i32_1 = arith.constant 0 : i32
    return %arg0, %c0_i32, %c0_i32_0 : i32, i32, i32
  }
}

</mosaic_0001>

<bundles_post_ra>
// kernel: tpu_custom_call.1
= control target key start
LH: loop header
LB: loop body
LE: loop exit
PB: predicated region body
PF: predicated region fallthrough
CT: control target
= control target key end

     0   :  { %s2970_s0 = inlined_call_operand.vmem [shape: f32[2,1,8], index: 0, kind: input, shape index: {}]   ;;  %s2971_s1 = inlined_call_operand.vmem [shape: f32[2,8,32], index: 1, kind: input, shape index: {}]   ;;  %s2972_s2 = inlined_call_operand.vmem [shape: bf16[2,4,32,8], index: 2, kind: input, shape index: {}]   ;;  %s2973_s3 = inlined_call_operand.vmem [shape: f32[2,4,1,8], index: 3, kind: input, shape index: {}]   ;;  %s2974_s4 = inlined_call_operand.vmem [shape: bf16[2,4,32,8], index: 4, kind: input, shape index: {}]   ;;  %s2975_s5 = inlined_call_operand.vmem [shape: f32[2,4,1,8], index: 5, kind: input, shape index: {}]   ;;  %s2976_s6 = inlined_call_operand.vmem [shape: bf16[2,4,32,8], index: 6, kind: input, shape index: {}]   ;;  %s2977_s7 = inlined_call_operand.vmem [shape: f32[2,4,1,8], index: 7, kind: input, shape index: {}]   ;;  %s2978_s8 = inlined_call_operand.vmem [shape: bf16[2,4,8,32], index: 8, kind: input, shape index: {}]   ;;  %s2979_s9 = inlined_call_operand.vmem [shape: f32[2,1,32], index: 9, kind: input, shape index: {}]   ;;  %s2980_s10 = inlined_call_operand.vmem [shape: f32[2,1,32], index: 10, kind: input, shape index: {}]   ;;  %s2981_s11 = inlined_call_operand.vmem [shape: f32[2,1,32], index: 11, kind: input, shape index: {}]   ;;  %s2982_s12 = inlined_call_operand.vmem [shape: bf16[2,32,16], index: 12, kind: input, shape index: {}]   ;;  %s2983_s13 = inlined_call_operand.vmem [shape: f32[2,1,16], index: 13, kind: input, shape index: {}]   ;;  %s2984_s14 = inlined_call_operand.vmem [shape: bf16[2,16,32], index: 14, kind: input, shape index: {}]   ;;  %s2985_s15 = inlined_call_operand.vmem [shape: f32[2,1,32], index: 15, kind: input, shape index: {}]   ;;  %s2986_s16 = inlined_call_operand.vmem [shape: f32[2,1,32], index: 16, kind: input, shape index: {}]   ;;  %s2987_s17 = inlined_call_operand.vmem [shape: f32[2,1,32], index: 17, kind: input, shape index: {}]   ;;  %s2988_s18 = inlined_call_operand.hbm [shape: f32[2,8,32], index: 18, kind: output, shape index: {}]  }
   0x1   :  { %3008 = sst [smem:[#allocation23_spill]] %s2970_s0 }
   0x2   :  { %3009 = sst [smem:[#allocation24_spill]] %s2971_s1 }
   0x3   :  { %3010 = sst [smem:[#allocation25_spill]] %s2972_s2 }
   0x4   :  { %3011 = sst [smem:[#allocation26_spill]] %s2973_s3 }
   0x5   :  { %3012 = sst [smem:[#allocation27_spill]] %s2974_s4 }
   0x6   :  { %3013 = sst [smem:[#allocation28_spill]] %s2975_s5 }
   0x7   :  { %3014 = sst [smem:[#allocation29_spill]] %s2976_s6 }
   0x8   :  { %3015 = sst [smem:[#allocation30_spill]] %s2977_s7 }
   0x9   :  { %3016 = sst [smem:[#allocation31_spill]] %s2978_s8 }
   0xa   :  { %3017 = sst [smem:[#allocation32_spill]] %s2981_s11 }
   0xb   :  { %3018 = sst [smem:[#allocation33_spill]] %s2982_s12 }
   0xc   :  { %3019 = sst [smem:[#allocation34_spill]] %s2986_s16 }
   0xd   :  { %3020 = sst [smem:[#allocation35_spill]] %s2987_s17 }
   0xe   :  { %3021 = sst [smem:[#allocation36_spill]] %s2988_s18 }
   0xf   :  { %23 = vsyncpa [#allocation4], 0 }
  0x10   :  { %25 = vsyncpa [#allocation4 + $0x1], 0  ;;  %s2587_s27 = smov 0   ;;  %s2589_s28 = smov 0  }
  0x11   :  { %s2591_s29 = smov 0   ;;  %s2593_s30 = smov 0  }
  0x12   :  { %s2595_s0 = smov 0   ;;  %s2597_s19 = smov 0  }
  0x13   :  { %s2599_s1 = smov 0   ;;  %s2601_s20 = smov 0  }
  0x14 LB: > { %3022 = sst [smem:[#allocation6_spill]] %s2459_s27  ;;  %s2035_s21 = sadd.s32 4294967295, %s2487_s20   ;;  %s2487_s20 = sphi %s2601_s20, %s31_s20   ;;  %s2483_s1 = sphi %s2599_s1, %s3083_s1   ;;  %s2479_s19 = sphi %s2597_s19, %s3082_s19   ;;  %s2475_s0 = sphi %s2595_s0, %s3081_s0   ;;  %s2471_s30 = sphi %s2593_s30, %s3080_s30   ;;  %s2467_s29 = sphi %s2591_s29, %s3079_s29   ;;  %s2463_s28 = sphi %s2589_s28, %s3078_s28   ;;  %s2459_s27 = sphi %s2587_s27, %s3077_s27  }
  0x15   : > { %3023 = sst [smem:[#allocation7_spill]] %s2463_s28  ;;  %s2036_s22 = sadd.s32 4294967294, %s2487_s20  }
  0x16   : > { %3024 = sst [smem:[#allocation8_spill]] %s2467_s29  ;;  %s40_s2 = sadd.s32 1, %s2479_s19 }
  0x17   : > { %3025 = sst [smem:[#allocation9_spill]] %s2471_s30  ;;  %p41_p0 = scmp.ge.s32.totalorder %s40_s2, 2 }
  0x18   : > { %3026 = sst [smem:[#allocation10_spill]] %s2475_s0  ;;  %s43_s23 = sadd.s32 1, %s2483_s1 }
  0x19   : > { %3027 = sst [smem:[#allocation11_spill]] %s2479_s19  ;;  %p528_p1 = scmp.ne.s32.totalorder %s2467_s29, %s2463_s28 }
  0x1a   : > { %3028 = sst [smem:[#allocation12_spill]] %s2483_s1  ;;  %p529_p2 = scmp.eq.s32.totalorder %s2035_s21, 3 }
  0x1b   : > { %3029 = sst [smem:[#allocation13_spill]] %s2487_s20  ;;  %s3085_s2 = smov (%p41_p0, %s40_s2), 0 }
  0x1c   : > { %3030 = sst [smem:[#allocation14_spill]] %s3085_s2  ;;  %s3087_s23 = smov (!%p41_p0, %s43_s23), %s2483_s1 }
  0x1d   : > { %p2636_p3 = por %p529_p2, %p528_p1  ;;  %p534_p4 = scmp.ne.s32.totalorder %s2463_s28, %s2459_s27 }
  0x1e   : > { %p45_p5 = scmp.ge.s32.totalorder %s3087_s23, 2  ;;  %p535_p6 = scmp.eq.s32.totalorder %s2036_s22, 3 }
  0x1f   : > { %s3031_s24 = scalar_select %p2636_p3, 1, 0 }
  0x20   : > { %p2039_p7 = scmp.ge.s32.totalorder %s2487_s20, 1  ;;  %p677_p8 = scmp.lt.s32.totalorder %s2487_s20, 5 }
  0x21   : > { %3032 = sst [smem:[#allocation15_spill]] %s3031_s24  ;;  %s3089_s23 = smov (%p45_p5, %s3087_s23), 0 }
  0x22   : > { %3033 = sst [smem:[#allocation16_spill]] %s3089_s23  ;;  %p2646_p9 = por %p535_p6, %p534_p4 }
  0x23   : > { %p678_p10 = pnand %p2039_p7, %p677_p8  ;;  %s515_s26 = ssub.s32 %s2483_s1, %s3089_s23 }
  0x24   : > { %s3034_s25 = scalar_select %p2646_p9, 1, 0 }
  0x25   : > { %s518_s21 = sadd.s32 1, %s2467_s29  ;;  %p516_p11 = scmp.eq.s32.totalorder %s515_s26, 0 }
  0x26   : > { %3035 = sst [smem:[#allocation17_spill]] %s3034_s25  ;;  %681 = sbr.rel (%p678_p10) target bundleno = 3198 (0xc7e), region = 92 }
  0x27   : > { %s2654_s2 = scalar_select %p516_p11, %s2467_s29, %s518_s21  }
  0x29   : > { %3036 = sst [smem:[#allocation18_spill]] %s2654_s2 }
  0x2b   : > { %s2994_s22 = sand.u32 1, %s2463_s28   ;;  %p796_p12 = scmp.lt.s32.totalorder %s2475_s0, 1 }
  0x2c   : > { %s2660_s19 = sshll.u32 %s2994_s22, 3  ;;  %p803_p13 = scmp.lt.s32.totalorder %s2471_s30, 1 }
  0x2d   : > { %s2664_s25 = scalar_select %p796_p12, %s2475_s0, 1 }
  0x2e   : > { %s2667_s26 = scalar_select %p803_p13, %s2471_s30, 1 }
  0x2f   : > { %3037 = sst [smem:[#allocation19_spill]] %s2664_s25  ;;  %s2041_s29 = sshll.u32 %s2664_s25, 3 }
  0x30   : > { %s3039_s20 = sld [smem:[#allocation24_spill]]  ;;  %s2245_s24 = sshll.u32 %s2667_s26, 6 }
  0x31   : > { %s3040_s30 = sld [smem:[#allocation25_spill]]  ;;  %s2044_s21 = sshll.u32 %s2667_s26, 2 }
  0x32   : > { %s3041_s3 = sld [smem:[#allocation26_spill]]  ;;  %s2248_s2 = sshll.u32 %s2667_s26, 4 }
  0x33   : > { %s3043_s4 = sld [smem:[#allocation27_spill]] }
  0x34   : > { %s3045_s5 = sld [smem:[#allocation28_spill]] }
  0x35   : > { %s3047_s6 = sld [smem:[#allocation29_spill]] }
  0x36   : > { %s802_s18 = scalar_lea.vmem %s3039_s20, %s2041_s29  ;;  %s3048_s7 = sld [smem:[#allocation30_spill]] }
  0x37   : > { %s2681_s23 = scalar_lea.vmem %s3040_s30, %s2245_s24  ;;  %s3049_s8 = sld [smem:[#allocation31_spill]] }
  0x38   : > { %s2687_s1 = scalar_lea.vmem %s3041_s3, %s2044_s21  ;;  %s3051_s12 = sld [smem:[#allocation33_spill]] }
  0x39   : > { %3042 = sst [smem:[#allocation20_spill]] %s2687_s1  ;;  %s2692_s27 = scalar_lea.vmem %s3043_s4, %s2245_s24 }
  0x3a   : > { %3044 = sst [smem:[#allocation21_spill]] %s2692_s27  ;;  %s2697_s28 = scalar_lea.vmem %s3045_s5, %s2044_s21 }
  0x3b   : > { %3046 = sst [smem:[#allocation22_spill]] %s2697_s28  ;;  %s2702_s22 = scalar_lea.vmem %s3047_s6, %s2245_s24 }
  0x3c   : > { %s2707_s3 = scalar_lea.vmem %s3048_s7, %s2044_s21  ;;  %s851_s7 = scalar_lea.vmem %s2983_s13, %s2667_s26 }
  0x3d   : > { %s2713_s1 = scalar_lea.vmem %s3049_s8, %s2248_s2  ;;  %s2250_s8 = sshll.u32 %s2667_s26, 3 }
  0x3e   : > { %s2730_s6 = scalar_lea.vmem %s3051_s12, %s2248_s2  ;;  %s859_s5 = scalar_lea.vmem %s2985_s15, %s2667_s26 }
  0x3f   : > { %s2744_s24 = scalar_lea.vmem %s2984_s14, %s2250_s8  ;;  %s3052_s16 = sld [smem:[#allocation34_spill]] }
  0x40   : > { %s3053_s12 = sld [smem:[#allocation35_spill]]  ;;  %s795_s4 = scalar_lea.vmem [#allocation3], %s2660_s19 }
  0x41   : > { %s3054_s25 = sld [smem:[#allocation9_spill]] }
  0x45   : > { %s862_s21 = scalar_lea.vmem %s3052_s16, %s2667_s26 }
  0x46   : > { %s865_s11 = scalar_lea.vmem %s3053_s12, %s2667_s26 }
  0x47   : > { %p2057_p0 = scmp.ne.s32.totalorder %s3054_s25, 0 }
  0x49   : > { %870 = sbr.rel (%p2057_p0) target bundleno = 80 (0x50), region = 96 }
  0x4e   : > { %v871_v0 = vld [vmem:[%s802_s18] sm:$0xff]  ;;  %vm872_vm0 = vcmask 261120  }
  0x4f   : > { %873 = vst.msk [vmem:[#allocation2] sm:$0xff] %vm872_vm0, %v871_v0 }
  0x50 PF: > { %s3055_s29 = sld [smem:[#allocation21_spill]]  ;;  %v2252_v1 = vld [vmem:[%s2681_s23 + $0x8] sm:$0xff]  ;;  %v2251_v3 = vld [vmem:[%s2681_s23] sm:$0xff]  ;;  %vm908_vm1 = vcmask 261120   ;;  %vm993_vm2 = vcmask 64512   ;;  %v877_v22 = vlaneseq  ;;  %v2489_v23 = vmov 0  }
  0x51   : > { %s3056_s8 = sld [smem:[#allocation22_spill]]  ;;  %918 = vmatpush.bf16.msra.mxu0 %v2252_v1  ;;  %v2256_v18 = vld [vmem:[%s2702_s22 + $0x8] sm:$0xff]  ;;  %v2255_v19 = vld [vmem:[%s2702_s22] sm:$0xff]  ;;  %v2490_v29 = vmov 0.0   ;;  %v2258_v36 = vld [vmem:[%s2681_s23 + $0x18] sm:$0xff]  ;;  %vm1031_vm7 = vcmask 1043456  }
  0x52   : > { %s3057_s20 = sld [smem:[#allocation20_spill]]  ;;  %984 = vmatpush.bf16.msra.mxu2 %v2256_v18  ;;  %v878_v25 = vshrl.u32 %v877_v22, 7  ;;  %v880_v26 = vand.u32 127, %v877_v22  ;;  %v2257_v37 = vld [vmem:[%s2681_s23 + $0x10] sm:$0xff]  ;;  %v2354_v45 = vld [vmem:[%s2707_s3] ss:$0 sm:$0xff] }
  0x53   : > { %s3058_s12 = sld [smem:[#allocation19_spill]]  ;;  %v2262_v57 = vld [vmem:[%s2702_s22 + $0x18] sm:$0xff]  ;;  %v2261_v58 = vld [vmem:[%s2702_s22 + $0x10] sm:$0xff]  ;;  %vm1713_vm12 = vcmask 130048  }
  0x54   : > { %s3059_s27 = sld [smem:[#allocation23_spill]]  ;;  %vm881_vm4 = vcmp.gt.s32.totalorder %v880_v26, %v878_v25 }
  0x55   : > { %919 = vmatpush.bf16.msra.mxu0 %v2251_v3  ;;  %s3063_s17 = sld [smem:[#allocation32_spill]] }
  0x56   : > { %v2254_v2 = vld [vmem:[%s3055_s29 + $0x8] sm:$0xff]  ;;  %v2253_v4 = vld [vmem:[%s3055_s29] sm:$0xff]  ;;  %v2260_v20 = vld [vmem:[%s3055_s29 + $0x18] sm:$0xff]  ;;  %985 = vmatpush.bf16.msra.mxu2 %v2255_v19 }
  0x57   : > { %951 = vmatpush.bf16.msra.mxu1 %v2254_v2  ;;  %v2760_v5 = vld [vmem:[#allocation2] sm:$0xff]  ;;  %v2259_v35 = vld [vmem:[%s3055_s29 + $0x10] sm:$0xff] }
  0x58   : > { %v2764_v6 = vpack.c.bf16 %v2760_v5, %v2760_v5  ;;  %v2353_v7 = vld [vmem:[%s3056_s8] ss:$0 sm:$0xff]  ;;  %v2355_v50 = vld [vmem:[%s3056_s8 + $0x1] ss:$0 sm:$0xff] }
  0x59   : > { %v2352_v10 = vld [vmem:[%s3057_s20] ss:$0 sm:$0xff]  ;;  %v2356_v63 = vld [vmem:[%s3057_s20 + $0x1] ss:$0 sm:$0xff] }
  0x5a   : > { %2066 = vmatmul.msk.bf16.vlgmr.msra.gmra.mxu0 %vm908_vm1, %v2764_v6  ;;  %s3060_s28 = scalar_lea.vmem %s3059_s27, %s3058_s12  ;;  %1113 = vmatpush.bf16.msrb.mxu2 %v2260_v20  ;;  %v1049_v2 = vld [vmem:[%s2713_s1] sm:$0xf] }
  0x5b   : > { %952 = vmatpush.bf16.msra.mxu1 %v2253_v4  ;;  %v876_v21 = vld [vmem:[%s3060_s28] sm:$0x1]  ;;  %2084 = vmatmul.msk.bf16.vlgmr.msra.gmra.mxu2 %vm908_vm1, %v2764_v6  ;;  %v1236_v3 = vsel %vm1031_vm7, %v1049_v2, 0  ;;  %v2357_v4 = vld [vmem:[%s2707_s3 + $0x1] ss:$0 sm:$0xff]  ;;  %s3064_s25 = scalar_lea.vmem %s3063_s17, %s2667_s26  ;;  %s3067_s28 = sld [smem:[#allocation9_spill]] }
  0x5c   : > { %vm882_vm3 = vcmp.gt.f32.partialorder %v876_v21, 0.5 }
  0x5d   : > { %v883_v24 = vsel %vm882_vm3, 1, %v2489_v23 }
  0x5e   : > { %2075 = vmatmul.msk.bf16.vlgmr.msra.gmra.mxu1 %vm908_vm1, %v2764_v6  ;;  %v884_v27 = vperm.slane %v883_v24, 0  ;;  %1114 = vmatpush.bf16.msrb.mxu2 %v2259_v35 }
  0x5f   : > { %1078 = vmatpush.bf16.msrb.mxu1 %v2258_v36  ;;  %v2131_v36 = vld [vmem:[%s2713_s1 + $0x4] sm:$0xf] }
  0x60   : > { %vm885_vm5 = vcmp.eq.s32.totalorder %v884_v27, 1  ;;  %v2266_v27 = vld [vmem:[%s3055_s29 + $0x28] sm:$0xff] }
  0x61   : > { %vm886_vm6 = vmor %vm881_vm4, %vm885_vm5  ;;  %p2240_p1 = scmp.ne.s32.totalorder %s3067_s28, 1 }
  0x62   : > { %v2784_v30 = vsel %vm886_vm6, -1e+09, %v2490_v29  ;;  %v2264_v29 = vld [vmem:[%s2681_s23 + $0x28] sm:$0xff] }
  0x63   : > { %1079 = vmatpush.bf16.msrb.mxu1 %v2257_v37  ;;  %v1217_v37 = vsel %vm1031_vm7, %v2131_v36, 0  ;;  %v2274_v36 = vld [vmem:[%s2702_s22 + $0x38] sm:$0xff] }
  0x64   : > { %1226 = vmatpush.bf16.msra.mxu2 %v1217_v37  ;;  %v2273_v37 = vld [vmem:[%s2702_s22 + $0x30] sm:$0xff] }
  0x6b   : > { %2114 = vmatmul.msk.bf16.vlgmr.msrb.gmra.mxu2 %vm908_vm1, %v2764_v6 }
  0x6e   : > { %2100 = vmatmul.msk.bf16.vlgmr.msrb.gmra.mxu1 %vm908_vm1, %v2764_v6 }
  0xd7   : > { %v921_v8 = vpop.f32.mrf.mxu0 }
  0xd8   : > { %v922_v13 = vadd.f32 %v2352_v10, %v921_v8 }
  0xda   : > { %v991_v17 = vpack.c.bf16 %v922_v13, %v922_v13 }
  0xdb   : > { %v954_v9 = vpop.f32.mrf.mxu1 }
  0xdc   : > { %v955_v11 = vadd.f32 %v2353_v7, %v954_v9 }
  0xde   : > { %v992_v12 = vpack.c.bf16 %v955_v11, %v955_v11  ;;  %v987_v38 = vpop.f32.mrf.mxu2 }
  0xdf   : > { %v923_v15 = vpop.f32.mrf.mxu0  ;;  %v988_v46 = vadd.f32 %v2354_v45, %v987_v38 }
  0xe0   : > { %v998_v14 = vsel %vm993_vm2, %v992_v12, 0 }
  0xe1   : > { %1007 = vmatpush.bf16.xpose.msra.mxu3 %v998_v14  ;;  %v1027_v47 = vpack.c.bf16 %v988_v46, %v988_v46  ;;  %v2359_v46 = vld [vmem:[%s3057_s20 + $0x2] ss:$0 sm:$0xff] }
  0xe3   : > { %v956_v16 = vpop.f32.mrf.mxu1  ;;  %v1033_v48 = vsel %vm1031_vm7, %v1027_v47, 0 }
  0xe4   : > { %1042 = vmatpush.bf16.msrb.mxu0 %v1033_v48 }
  0xe6   : > { %v989_v42 = vpop.f32.mrf.mxu2 }
  0xe8   : > { %2085 = vmatmul.msk.bf16.vlgmr.msra.gmra.mxu3 %vm993_vm2, %v991_v17 }
  0xe9   : > { %1148 = vmatpush.bf16.msrb.mxu3 %v2262_v57 }
  0xeb   : > { %v1081_v54 = vpop.f32.mrf.mxu1 }
  0xec   : > { %v1082_v0 = vadd.f32 %v2356_v63, %v1081_v54  ;;  %v2267_v54 = vld [vmem:[%s2702_s22 + $0x20] sm:$0xff] }
  0xed   : > { %1149 = vmatpush.bf16.msrb.mxu3 %v2261_v58 }
  0xee   : > { %v1116_v49 = vpop.f32.mrf.mxu2  ;;  %v1155_v1 = vpack.c.bf16 %v1082_v0, %v1082_v0 }
  0xef   : > { %v1117_v51 = vadd.f32 %v2355_v50, %v1116_v49 }
  0xf1   : > { %v1156_v52 = vpack.c.bf16 %v1117_v51, %v1117_v51  ;;  %1245 = vmatpush.bf16.msra.mxu3 %v1236_v3 }
  0xf3   : > { %v1161_v53 = vsel %vm993_vm2, %v1156_v52, 0  ;;  %v1083_v56 = vpop.f32.mrf.mxu1 }
  0xf4   : > { %1170 = vmatpush.bf16.xpose.msra.mxu0 %v1161_v53  ;;  %v2268_v53 = vld [vmem:[%s2702_s22 + $0x28] sm:$0xff]  ;;  %s3061_s22 = scalar_lea.vmem %s2979_s9, %s2667_s26 }
  0xf5   : > { %1349 = vmatpush.bf16.msrb.mxu2 %v2268_v53 }
  0xf6   : > { %v1118_v55 = vpop.f32.mrf.mxu2 }
  0xf8   : > { %2128 = vmatmul.msk.bf16.vlgmr.msrb.gmra.mxu3 %vm908_vm1, %v2764_v6 }
  0xf9   : > { %1350 = vmatpush.bf16.msrb.mxu2 %v2267_v54 }
 0x16b   : > { %v1009_v28 = vpop.f32.mrf.mxu3 }
 0x16c   : > { %v1013_v31 = vmul.f32 0.35355338, %v1009_v28  ;;  %v2265_v28 = vld [vmem:[%s3055_s29 + $0x20] sm:$0xff] }
 0x16e   : > { %v1014_v32 = vadd.f32 %v1013_v31, %v2784_v30  ;;  %v2263_v31 = vld [vmem:[%s2681_s23 + $0x20] sm:$0xff] }
 0x170   : > { %v1015_v33 = vsel %vm993_vm2, %v1014_v32, -inf }
 0x171   : > { %1016 = vmax.xlane.f32.xlu0 %v1015_v33 }
 0x173   : > { %v1011_v34 = vpop.f32.mrf.mxu3 }
 0x17b   : > { %v1151_v7 = vpop.f32.mrf.mxu3 }
 0x17c   : > { %v1152_v9 = vadd.f32 %v2357_v4, %v1151_v7 }
 0x17e   : > { %v1190_v11 = vpack.c.bf16 %v1152_v9, %v1152_v9 }
 0x180   : > { %v1195_v12 = vsel %vm1031_vm7, %v1190_v11, 0  ;;  %v2271_v11 = vld [vmem:[%s3055_s29 + $0x30] sm:$0xff] }
 0x181   : > { %1204 = vmatpush.bf16.msra.mxu1 %v1195_v12  ;;  %v2270_v12 = vld [vmem:[%s2681_s23 + $0x38] sm:$0xff] }
 0x183   : > { %v1153_v13 = vpop.f32.mrf.mxu3 }
 0x184   : > { %v2269_v13 = vld [vmem:[%s2681_s23 + $0x30] sm:$0xff] }
 0x185   : > { %1314 = vmatpush.bf16.msrb.mxu1 %v2266_v27 }
 0x189   : > { %1315 = vmatpush.bf16.msrb.mxu1 %v2265_v28 }
 0x1e4   : > { %v1017_v39 = vpop.xlane.xlu0 %1016 }
 0x1e5   : > { %v1018_v40 = vsub.f32 %v1014_v32, %v1017_v39 }
 0x1e7   : > { %v1019_v41 = vmul.f32 1.442695, %v1018_v40 }
 0x1e9   : > { %2371 = vpow2.f32 %v1019_v41 }
 0x1ef   : > { %v2372_v43 = vpop.eup %2371 }
 0x1f0   : > { %v1021_v44 = vsel %vm993_vm2, %v2372_v43, 0.0 }
 0x1f1   : > { %1022 = vadd.xlane.f32.xlu0 %v1021_v44 }
 0x264   : > { %v1023_v59 = vpop.xlane.xlu0 %1022 }
 0x265   : > { %2373 = vrcp.f32 %v1023_v59 }
 0x26b   : > { %v2374_v60 = vpop.eup %2373 }
 0x26c   : > { %v1025_v61 = vmul.f32 %v2374_v60, %v2372_v43  ;;  %v2358_v43 = vld [vmem:[%s3056_s8 + $0x2] ss:$0 sm:$0xff] }
 0x26e   : > { %v1026_v62 = vpack.c.bf16 %v1025_v61, %v1025_v61  ;;  %v2272_v61 = vld [vmem:[%s3055_s29 + $0x38] sm:$0xff] }
 0x270   : > { %2086 = vmatmul.msk.bf16.vlgmr.msrb.gmra.mxu0 %vm993_vm2, %v1026_v62  ;;  %v2360_v62 = vld [vmem:[%s2707_s3 + $0x2] ss:$0 sm:$0xff] }
 0x271   : > { %1279 = vmatpush.bf16.msrb.mxu0 %v2264_v29 }
 0x275   : > { %1280 = vmatpush.bf16.msrb.mxu0 %v2263_v31 }
 0x280   : > { %2129 = vmatmul.msk.bf16.vlgmr.msra.gmra.mxu0 %vm993_vm2, %v1155_v1 }
 0x290   : > { %2147 = vmatmul.msk.bf16.vlgmr.msrb.gmra.mxu0 %vm908_vm1, %v2764_v6 }
 0x2ed   : > { %v1044_v8 = vpop.f32.mrf.mxu0 }
 0x2ee   : > { %v1048_v10 = vpack.c.bf16 %v1044_v8, %v1044_v8 }
 0x2f0   : > { %2133 = vmatmul.msk.bf16.vlgmr.msra.gmra.mxu3 %vm993_vm2, %v1048_v10 }
 0x2f5   : > { %v1046_v14 = vpop.f32.mrf.mxu0 }
 0x2f6   : > { %v2178_v14 = vld [vmem:[%s2713_s1 + $0x8] sm:$0xf] }
 0x2fd   : > { %v1172_v15 = vpop.f32.mrf.mxu0 }
 0x2fe   : > { %v1176_v16 = vmul.f32 0.35355338, %v1172_v15  ;;  %v1418_v15 = vsel %vm1031_vm7, %v2178_v14, 0 }
 0x300   : > { %v1177_v17 = vadd.f32 %v1176_v16, %v2784_v30 }
 0x302   : > { %v1178_v18 = vsel %vm993_vm2, %v1177_v17, -inf }
 0x303   : > { %1179 = vmax.xlane.f32.xlu1 %v1178_v18 }
 0x305   : > { %v1174_v19 = vpop.f32.mrf.mxu0 }
 0x30d   : > { %v1282_v38 = vpop.f32.mrf.mxu0 }
 0x30e   : > { %v1283_v49 = vadd.f32 %v2359_v46, %v1282_v38 }
 0x310   : > { %v1356_v51 = vpack.c.bf16 %v1283_v49, %v1283_v49 }
 0x315   : > { %v1284_v39 = vpop.f32.mrf.mxu0 }
 0x373   : > { %v2814_v20 = vpop.f32.mrf.mxu3 }
 0x376   : > { %v1180_v21 = vpop.xlane.xlu1 %1179 }
 0x377   : > { %v1181_v22 = vsub.f32 %v1177_v17, %v1180_v21  ;;  %v2361_v21 = vld [vmem:[%s3056_s8 + $0x3] ss:$0 sm:$0xff] }
 0x379   : > { %v1182_v23 = vmul.f32 1.442695, %v1181_v22 }
 0x37b   : > { %2375 = vpow2.f32 %v1182_v23  ;;  %v1249_v24 = vpop.f32.mrf.mxu3 }
 0x381   : > { %v2376_v25 = vpop.eup %2375 }
 0x382   : > { %v1184_v26 = vsel %vm993_vm2, %v2376_v25, 0.0 }
 0x383   : > { %1185 = vadd.xlane.f32.xlu1 %v1184_v26 }
 0x3f6   : > { %v1186_v32 = vpop.xlane.xlu1 %1185 }
 0x3f7   : > { %2377 = vrcp.f32 %v1186_v32  ;;  %v2362_v32 = vld [vmem:[%s3057_s20 + $0x3] ss:$0 sm:$0xff] }
 0x3fd   : > { %v2378_v33 = vpop.eup %2377 }
 0x3fe   : > { %v1188_v34 = vmul.f32 %v2378_v33, %v2376_v25 }
 0x400   : > { %v1189_v35 = vpack.c.bf16 %v1188_v34, %v1188_v34 }
 0x402   : > { %2130 = vmatmul.msk.bf16.vlgmr.msra.gmra.mxu1 %vm993_vm2, %v1189_v35 }
 0x403   : > { %1427 = vmatpush.bf16.msra.mxu1 %v1418_v15 }
 0x412   : > { %2161 = vmatmul.msk.bf16.vlgmr.msrb.gmra.mxu1 %vm908_vm1, %v2764_v6 }
 0x47f   : > { %v1206_v40 = vpop.f32.mrf.mxu1 }
 0x480   : > { %v1210_v41 = vpack.c.bf16 %v1206_v40, %v1206_v40 }
 0x482   : > { %2132 = vmatmul.msk.bf16.vlgmr.msra.gmra.mxu2 %vm993_vm2, %v1210_v41 }
 0x483   : > { %1462 = vmatpush.bf16.msra.mxu2 %v2270_v12 }
 0x487   : > { %v1208_v42 = vpop.f32.mrf.mxu1  ;;  %1463 = vmatpush.bf16.msra.mxu2 %v2269_v13 }
 0x48f   : > { %v1317_v44 = vpop.f32.mrf.mxu1 }
 0x490   : > { %v1318_v45 = vadd.f32 %v2358_v43, %v1317_v44 }
 0x492   : > { %v1357_v47 = vpack.c.bf16 %v1318_v45, %v1318_v45  ;;  %2175 = vmatmul.msk.bf16.vlgmr.msrb.gmra.mxu2 %vm908_vm1, %v2764_v6 }
 0x494   : > { %v1362_v48 = vsel %vm993_vm2, %v1357_v47, 0  ;;  %v2363_v47 = vld [vmem:[%s2707_s3 + $0x3] ss:$0 sm:$0xff] }
 0x495   : > { %1371 = vmatpush.bf16.xpose.msrb.mxu3 %v1362_v48 }
 0x497   : > { %v1319_v50 = vpop.f32.mrf.mxu1 }
 0x49c   : > { %2176 = vmatmul.msk.bf16.vlgmr.msrb.gmra.mxu3 %vm993_vm2, %v1356_v51 }
 0x49d   : > { %1497 = vmatpush.bf16.msra.mxu3 %v2272_v61 }
 0x4a1   : > { %1498 = vmatpush.bf16.msra.mxu3 %v2271_v11 }
 0x4a2   : > { %2193 = vmatmul.msk.bf16.vlgmr.msra.gmra.mxu2 %vm908_vm1, %v2764_v6 }
 0x4ac   : > { %2207 = vmatmul.msk.bf16.vlgmr.msra.gmra.mxu3 %vm908_vm1, %v2764_v6 }
 0x505   : > { %v2833_v52 = vpop.f32.mrf.mxu2 }
 0x506   : > { %v1248_v38 = vadd.f32 %v2814_v20, %v2833_v52 }
 0x50d   : > { %v1230_v55 = vpop.f32.mrf.mxu2 }
 0x50e   : > { %v2224_v55 = vld [vmem:[%s2713_s1 + $0xc] sm:$0xf] }
 0x515   : > { %v1352_v63 = vpop.f32.mrf.mxu2 }
 0x516   : > { %v1353_v0 = vadd.f32 %v2360_v62, %v1352_v63 }
 0x518   : > { %v1391_v1 = vpack.c.bf16 %v1353_v0, %v1353_v0  ;;  %v2364_v0 = vld [vmem:[%s3061_s22] ss:$0 sm:$0xff] }
 0x51a   : > { %v1396_v3 = vsel %vm1031_vm7, %v1391_v1, 0 }
 0x51b   : > { %1405 = vmatpush.bf16.msra.mxu0 %v1396_v3 }
 0x51d   : > { %v1354_v8 = vpop.f32.mrf.mxu2 }
 0x51f   : > { %v1373_v56 = vpop.f32.mrf.mxu3  ;;  %1532 = vmatpush.bf16.msrb.mxu0 %v2274_v36 }
 0x520   : > { %v1377_v57 = vmul.f32 0.35355338, %v1373_v56  ;;  %v1601_v56 = vsel %vm1031_vm7, %v2224_v55, 0 }
 0x521   : > { %1610 = vmatpush.bf16.msrb.mxu3 %v1601_v56 }
 0x522   : > { %v1378_v58 = vadd.f32 %v1377_v57, %v2784_v30 }
 0x523   : > { %1533 = vmatpush.bf16.msrb.mxu0 %v2273_v37 }
 0x524   : > { %v1379_v59 = vsel %vm993_vm2, %v1378_v58, -inf }
 0x525   : > { %1380 = vmax.xlane.f32.xlu2 %v1379_v59  ;;  %v1465_v27 = vpop.f32.mrf.mxu2 }
 0x526   : > { %v1466_v34 = vadd.f32 %v2362_v32, %v1465_v27 }
 0x527   : > { %v1375_v60 = vpop.f32.mrf.mxu3 }
 0x528   : > { %v1539_v35 = vpack.c.bf16 %v1466_v34, %v1466_v34 }
 0x52d   : > { %v1467_v28 = vpop.f32.mrf.mxu2 }
 0x52f   : > { %v1500_v22 = vpop.f32.mrf.mxu3 }
 0x530   : > { %v1501_v23 = vadd.f32 %v2361_v21, %v1500_v22  ;;  %v2276_v21 = vld [vmem:[%s2730_s6 + $0x8] sm:$0xff]  ;;  %v2275_v22 = vld [vmem:[%s2730_s6] sm:$0xff]  ;;  %s3062_s6 = scalar_lea.vmem %s2980_s10, %s2667_s26 }
 0x532   : > { %v1540_v24 = vpack.c.bf16 %v1501_v23, %v1501_v23 }
 0x534   : > { %v1545_v25 = vsel %vm993_vm2, %v1540_v24, 0 }
 0x535   : > { %1554 = vmatpush.bf16.xpose.msrb.mxu1 %v1545_v25 }
 0x537   : > { %v1502_v26 = vpop.f32.mrf.mxu3 }
 0x598   : > { %v1381_v2 = vpop.xlane.xlu2 %1380 }
 0x599   : > { %v1382_v4 = vsub.f32 %v1378_v58, %v1381_v2 }
 0x59b   : > { %v1383_v7 = vmul.f32 1.442695, %v1382_v4 }
 0x59d   : > { %2379 = vpow2.f32 %v1383_v7 }
 0x5a3   : > { %v2380_v9 = vpop.eup %2379 }
 0x5a4   : > { %v1385_v10 = vsel %vm993_vm2, %v2380_v9, 0.0 }
 0x5a5   : > { %1386 = vadd.xlane.f32.xlu2 %v1385_v10 }
 0x618   : > { %v1387_v16 = vpop.xlane.xlu2 %1386 }
 0x619   : > { %2381 = vrcp.f32 %v1387_v16 }
 0x61f   : > { %v2382_v17 = vpop.eup %2381 }
 0x620   : > { %v1389_v18 = vmul.f32 %v2382_v17, %v2380_v9  ;;  %v2491_v9 = vmov 32.0  }
 0x622   : > { %v1390_v19 = vpack.c.bf16 %v1389_v18, %v1389_v18 }
 0x624   : > { %2177 = vmatmul.msk.bf16.vlgmr.msra.gmra.mxu0 %vm993_vm2, %v1390_v19 }
 0x625   : > { %1692 = vmatpush.bf16.msra.mxu0 %v2276_v21 }
 0x629   : > { %1693 = vmatpush.bf16.msra.mxu0 %v2275_v22 }
 0x634   : > { %2221 = vmatmul.msk.bf16.vlgmr.msrb.gmra.mxu0 %vm908_vm1, %v2764_v6 }
 0x6a1   : > { %v1407_v29 = vpop.f32.mrf.mxu0 }
 0x6a2   : > { %v1411_v31 = vpack.c.bf16 %v1407_v29, %v1407_v29 }
 0x6a4   : > { %2179 = vmatmul.msk.bf16.vlgmr.msra.gmra.mxu1 %vm993_vm2, %v1411_v31 }
 0x6a9   : > { %v1409_v33 = vpop.f32.mrf.mxu0 }
 0x6aa   : > { %v2365_v33 = vld [vmem:[%s3062_s6] ss:$0 sm:$0xff] }
 0x6b1   : > { %v1535_v48 = vpop.f32.mrf.mxu0 }
 0x6b2   : > { %v1536_v49 = vadd.f32 %v2363_v47, %v1535_v48  ;;  %v2368_v47 = vld [vmem:[%s859_s5] ss:$0 sm:$0xff] }
 0x6b4   : > { %2222 = vmatmul.msk.bf16.vlgmr.msrb.gmra.mxu1 %vm993_vm2, %v1539_v35  ;;  %v1574_v50 = vpack.c.bf16 %v1536_v49, %v1536_v49  ;;  %v2366_v35 = vld [vmem:[%s3064_s25] ss:$0 sm:$0xff] }
 0x6b6   : > { %v1579_v20 = vsel %vm1031_vm7, %v1574_v50, 0 }
 0x6b7   : > { %1588 = vmatpush.bf16.msrb.mxu2 %v1579_v20 }
 0x6b9   : > { %v1537_v51 = vpop.f32.mrf.mxu0 }
 0x721   : > { %v1429_v39 = vpop.f32.mrf.mxu1 }
 0x722   : > { %v1433_v40 = vadd.f32 %v1429_v39, %v1248_v38 }
 0x729   : > { %v1431_v41 = vpop.f32.mrf.mxu1 }
 0x72a   : > { %v2367_v41 = vld [vmem:[%s851_s7] ss:$0 sm:$0xff] }
 0x731   : > { %v1556_v42 = vpop.f32.mrf.mxu1 }
 0x732   : > { %v1560_v43 = vmul.f32 0.35355338, %v1556_v42 }
 0x734   : > { %v1561_v44 = vadd.f32 %v1560_v43, %v2784_v30 }
 0x736   : > { %v1562_v45 = vsel %vm993_vm2, %v1561_v44, -inf }
 0x737   : > { %1563 = vmax.xlane.f32.xlu0 %v1562_v45 }
 0x739   : > { %v1558_v46 = vpop.f32.mrf.mxu1 }
 0x7aa   : > { %v1564_v52 = vpop.xlane.xlu0 %1563 }
 0x7ab   : > { %v1565_v6 = vsub.f32 %v1561_v44, %v1564_v52 }
 0x7ad   : > { %v1566_v53 = vmul.f32 1.442695, %v1565_v6 }
 0x7af   : > { %2383 = vpow2.f32 %v1566_v53 }
 0x7b5   : > { %v2384_v54 = vpop.eup %2383 }
 0x7b6   : > { %v1568_v30 = vsel %vm993_vm2, %v2384_v54, 0.0 }
 0x7b7   : > { %1569 = vadd.xlane.f32.xlu1 %v1568_v30 }
 0x82a   : > { %v1570_v57 = vpop.xlane.xlu1 %1569 }
 0x82b   : > { %2385 = vrcp.f32 %v1570_v57 }
 0x82c   : > { %2387 = vrcp.f32 %v2491_v9 }
 0x831   : > { %v2386_v58 = vpop.eup %2385 }
 0x832   : > { %v1572_v59 = vmul.f32 %v2386_v58, %v2384_v54  ;;  %v2388_v10 = vpop.eup %2387 }
 0x833   : > { %v1629_v11 = vmul.f32 32.0, %v2388_v10  ;;  %vm1633_vm8 = vweird.f32 %v2388_v10 }
 0x834   : > { %v1573_v60 = vpack.c.bf16 %v1572_v59, %v1572_v59 }
 0x835   : > { %v1630_v12 = vsub.f32 1.0, %v1629_v11 }
 0x836   : > { %2223 = vmatmul.msk.bf16.vlgmr.msrb.gmra.mxu2 %vm993_vm2, %v1573_v60 }
 0x837   : > { %v1631_v13 = vmul.f32 %v2388_v10, %v1630_v12 }
 0x839   : > { %v1632_v14 = vadd.f32 %v2388_v10, %v1631_v13 }
 0x83b   : > { %v1634_v15 = vsel %vm1633_vm8, %v2388_v10, %v1632_v14 }
 0x8b9   : > { %v1590_v61 = vpop.f32.mrf.mxu2 }
 0x8ba   : > { %v1594_v62 = vpack.c.bf16 %v1590_v61, %v1590_v61 }
 0x8bc   : > { %2225 = vmatmul.msk.bf16.vlgmr.msrb.gmra.mxu3 %vm993_vm2, %v1594_v62 }
 0x8c1   : > { %v1592_v63 = vpop.f32.mrf.mxu2 }
 0x93f   : > { %v1612_v1 = vpop.f32.mrf.mxu3 }
 0x940   : > { %v1616_v2 = vadd.f32 %v1612_v1, %v1433_v40  ;;  %v2277_v40 = vld [vmem:[%s2744_s24] sm:$0xff] }
 0x941   : > { %1724 = vmatpush.bf16.msra.mxu1 %v2277_v40 }
 0x942   : > { %v1621_v3 = vadd.f32 %v2364_v0, %v1616_v2  ;;  %v2369_v0 = vld [vmem:[%s862_s21] ss:$0 sm:$0xff] }
 0x943   : > { %v2370_v2 = vld [vmem:[%s865_s11] ss:$0 sm:$0xff] }
 0x944   : > { %v1622_v4 = vadd.f32 %v1621_v3, %v2760_v5 }
 0x946   : > { %v1625_v7 = vsel %vm908_vm1, %v1622_v4, 0.0 }
 0x947   : > { %1626 = vadd.xlane.f32.xlu2 %v1625_v7  ;;  %v1614_v8 = vpop.f32.mrf.mxu3 }
 0x9ba   : > { %v1627_v16 = vpop.xlane.xlu2 %1626 }
 0x9bb   : > { %v1635_v17 = vmul.f32 %v1634_v15, %v1627_v16 }
 0x9bd   : > { %v1636_v18 = vsub.f32 %v1622_v4, %v1635_v17 }
 0x9bf   : > { %v1637_v19 = vmul.f32 %v1636_v18, %v1636_v18 }
 0x9c1   : > { %v1638_v5 = vsel %vm908_vm1, %v1637_v19, 0.0 }
 0x9c2   : > { %1639 = vadd.xlane.f32.xlu0 %v1638_v5 }
 0xa35   : > { %v1640_v23 = vpop.xlane.xlu0 %1639 }
 0xa36   : > { %v1641_v24 = vmul.f32 %v1640_v23, %v1634_v15 }
 0xa38   : > { %v1642_v25 = vadd.f32 1e-05, %v1641_v24 }
 0xa3a   : > { %2389 = vrsqrt.f32 %v1642_v25  ;;  %vm1649_vm10 = vweird.f32 %v1642_v25 }
 0xa40   : > { %v2390_v26 = vpop.eup %2389 }
 0xa41   : > { %v1644_v27 = vmul.f32 %v2390_v26, %v1642_v25  ;;  %vm1650_vm9 = vweird.f32 %v2390_v26 }
 0xa42   : > { %vm1651_vm11 = vmor %vm1649_vm10, %vm1650_vm9 }
 0xa43   : > { %v1645_v28 = vmul.f32 %v2390_v26, %v1644_v27 }
 0xa45   : > { %v1646_v29 = vmul.f32 0.5, %v1645_v28 }
 0xa47   : > { %v1647_v31 = vsub.f32 1.5, %v1646_v29 }
 0xa49   : > { %v1648_v32 = vmul.f32 %v2390_v26, %v1647_v31 }
 0xa4b   : > { %v1652_v34 = vsel %vm1651_vm11, %v2390_v26, %v1648_v32 }
 0xa4c   : > { %v1653_v36 = vmul.f32 %v1652_v34, %v1636_v18 }
 0xa4e   : > { %v1657_v37 = vmul.f32 %v2365_v33, %v1653_v36 }
 0xa50   : > { %v1661_v38 = vadd.f32 %v2366_v35, %v1657_v37 }
 0xa52   : > { %v1662_v39 = vpack.c.bf16 %v1661_v38, %v1661_v38 }
 0xa54   : > { %2234 = vmatmul.msk.bf16.vlgmr.msra.gmra.mxu0 %vm908_vm1, %v1662_v39 }
 0xad1   : > { %v1695_v42 = vpop.f32.mrf.mxu0 }
 0xad2   : > { %v1696_v43 = vadd.f32 %v2367_v41, %v1695_v42 }
 0xad4   : > { %v1699_v44 = vmax.f32 %v1696_v43, 0.0 }
 0xad6   : > { %v1700_v45 = vpack.c.bf16 %v1699_v44, %v1699_v44 }
 0xad8   : > { %2239 = vmatmul.msk.bf16.vlgmr.msra.gmra.mxu1 %vm1713_vm12, %v1700_v45 }
 0xad9   : > { %v1697_v46 = vpop.f32.mrf.mxu0 }
 0xb55   : > { %v1726_v48 = vpop.f32.mrf.mxu1 }
 0xb56   : > { %v1727_v49 = vadd.f32 %v2368_v47, %v1726_v48 }
 0xb58   : > { %v1730_v50 = vadd.f32 %v1727_v49, %v1661_v38 }
 0xb5a   : > { %v1733_v20 = vsel %vm908_vm1, %v1730_v50, 0.0 }
 0xb5b   : > { %1734 = vadd.xlane.f32.xlu1 %v1733_v20 }
 0xb5d   : > { %v1728_v51 = vpop.f32.mrf.mxu1 }
 0xbce   : > { %v1735_v52 = vpop.xlane.xlu1 %1734 }
 0xbcf   : > { %v1736_v6 = vmul.f32 %v1735_v52, %v1634_v15 }
 0xbd1   : > { %v1737_v53 = vsub.f32 %v1730_v50, %v1736_v6 }
 0xbd3   : > { %v1738_v54 = vmul.f32 %v1737_v53, %v1737_v53 }
 0xbd5   : > { %v1739_v30 = vsel %vm908_vm1, %v1738_v54, 0.0 }
 0xbd6   : > { %1740 = vadd.xlane.f32.xlu2 %v1739_v30 }
 0xc49   : > { %v1741_v55 = vpop.xlane.xlu2 %1740 }
 0xc4a   : > { %v1742_v56 = vmul.f32 %v1741_v55, %v1634_v15 }
 0xc4c   : > { %v1743_v57 = vadd.f32 1e-05, %v1742_v56 }
 0xc4e   : > { %2391 = vrsqrt.f32 %v1743_v57  ;;  %vm1750_vm14 = vweird.f32 %v1743_v57 }
 0xc54   : > { %v2392_v58 = vpop.eup %2391 }
 0xc55   : > { %v1745_v59 = vmul.f32 %v2392_v58, %v1743_v57  ;;  %vm1751_vm13 = vweird.f32 %v2392_v58 }
 0xc56   : > { %vm1752_vm15 = vmor %vm1750_vm14, %vm1751_vm13 }
 0xc57   : > { %v1746_v60 = vmul.f32 %v2392_v58, %v1745_v59 }
 0xc59   : > { %v1747_v61 = vmul.f32 0.5, %v1746_v60 }
 0xc5b   : > { %v1748_v62 = vsub.f32 1.5, %v1747_v61 }
 0xc5d   : > { %v1749_v63 = vmul.f32 %v2392_v58, %v1748_v62 }
 0xc5f   : > { %v1753_v1 = vsel %vm1752_vm15, %v2392_v58, %v1749_v63 }
 0xc60   : > { %v1754_v3 = vmul.f32 %v1753_v1, %v1737_v53 }
 0xc62   : > { %v1758_v4 = vmul.f32 %v2369_v0, %v1754_v3  ;;  %1767 = sbr.rel (%p2240_p1) target bundleno = 3176 (0xc68), region = 100 }
 0xc64   : > { %v1762_v7 = vadd.f32 %v2370_v2, %v1758_v4 }
 0xc66   : > { %1763 = vst.msk [vmem:[#allocation2] sm:$0xff] %vm908_vm1, %v1762_v7 }
 0xc67   : > { %1768 = vst.msk [vmem:[%s795_s4] sm:$0xff] %vm908_vm1, %v1762_v7 }
 0xc68 PF: > { %s3068_s21 = sld [smem:[#allocation10_spill]]  ;;  %s1782_s0 = sshll.u32 %s795_s4, 4  ;;  %s1783_s0 = int_to_ptr.vmem [resolvable:$true] %s1782_s0 }
 0xc69   : > { %s3069_s3 = sld [smem:[#allocation7_spill]] }
 0xc6a   : > { %s3071_s1 = sld [smem:[#allocation36_spill]] }
 0xc6e   : > { %s2242_s22 = sshll.u32 %s3068_s21, 3 }
 0xc6f   : > { %s3073_s17 = sand.u32 1, %s3069_s3  }
 0xc70   : > { %s3072_s6 = smov %s3071_s1  ;;  %s1780_s30 = scalar_lea.hbm %s3071_s1, %s2242_s22 }
 0xc71   : > { %s1784_s2 = sshll.u32 %s1780_s30, 4  ;;  %s1770_s25 = scalar_lea.sflag [#allocation4], %s3073_s17  ;;  %s1785_s2 = int_to_ptr.hbm [resolvable:$true] %s1784_s2 }
 0xc72   : > { %s2407_s29 = sshra.s32 %s1785_s2, 4  ;;  %s2413_s5 = scalar_lea.hbm %s3072_s6, 16  ;;  %s2408_s29 = int_to_ptr.hbm [resolvable:$true] %s2407_s29 }
 0xc73   : > { %s2409_s8 = scalar_lea.hbm %s2408_s29, 8  ;;  %p2414_p6 = scmp.lt.s32.totalorder %s2408_s29, %s3072_s6 }
 0xc74   : > { %p2410_p2 = scmp.ne.s32.totalorder %s2408_s29, %s2409_s8  ;;  %p2415_p7 = scmp.lt.s32.totalorder %s2413_s5, %s2409_s8 }
 0xc76   : > { %p2411_p4 = pnand %p2410_p2, %p2636_p3  ;;  %p2416_p8 = por %p2415_p7, %p2414_p6 }
 0xc78   : > { %p2412_p5 = pneg %p2411_p4 }
 0xc7a   : > { %p2417_p10 = pnand %p2416_p8, %p2412_p5 }
 0xc7c   : > { %2420 = shalt.err (!%p2417_p10)
}
 0xc7d   : > { %2278 = dma.vmem_to_hbm [thread:$0]  (%p2636_p3), %s1783_s0, 128, %s1785_s2, %s1770_s25  }
 0xc7e PF: > { %s3074_s19 = sld [smem:[#allocation13_spill]] }
 0xc7f   : > { %s3075_s4 = sld [smem:[#allocation6_spill]] }
 0xc84   : > { %p2284_p11 = scmp.ge.s32.totalorder %s3074_s19, 2 }
 0xc85   : > { %s1796_s16 = sand.u32 1, %s3075_s4  }
 0xc86   : > { %p2281_p12 = pnand %p2284_p11, %p2646_p9  ;;  %s1797_s27 = scalar_lea.sflag [#allocation4], %s1796_s16 }
 0xc88   : > { %p2282_p13 = pneg %p2281_p12 }
 0xc8a   : > { %2454 = dma.done.wait (%p2282_p13), %s1797_s27, 128  }
 0xc8b   : > { %2456 = vsyncadd (%p2282_p13), %s1797_s27, 4294967168  ;;  %s31_s20 = sadd.s32 1, %s3074_s19   ;;  %s3077_s27 = sld [smem:[#allocation7_spill]] }
 0xc8c   : > { %p28_p0 = scmp.ge.s32.totalorder %s31_s20, 6   ;;  %s3078_s28 = sld [smem:[#allocation8_spill]] }
 0xc8d   : > { %s3079_s29 = sld [smem:[#allocation18_spill]] }
 0xc8e   : > { %s3080_s30 = sld [smem:[#allocation11_spill]]  ;;  %30 = sbr.rel (!%p28_p0) target bundleno = 20 (0x14), region = 207 }
 0xc8f   : > { %s3081_s0 = sld [smem:[#allocation12_spill]] }
 0xc90   : > { %s3082_s19 = sld [smem:[#allocation14_spill]] }
 0xc91   : > { %s3083_s1 = sld [smem:[#allocation16_spill]] }
 0xc93   :  { %1803 = vsyncpa [#allocation4], 1 }
 0xc94   :  { %1805 = vsyncpa [#allocation4 + $0x1], 1 }

</bundles_post_ra>
